<compile_context>
chip_gen: v7x
topology: tpu7x:2x2x1
jax: 0.10.0
libtpu: 0.0.40
codegen_flags: <defaults>
</compile_context>

<pallas_src>
import functools

import jax
import jax.numpy as jnp
from jax.experimental import pallas as pl
from jax.experimental.pallas import tpu as pltpu

# 8 ray directions in the exact order the PyTorch module builds its kernels:
# yi in [-1,0,1], xi in [-1,0,1], skipping (0,0).
_DIRS = [(-1, -1), (-1, 0), (-1, 1), (0, -1), (0, 1), (1, -1), (1, 0), (1, 1)]
# 4 base directions; each also yields its opposite from the same ray sums.
# This pair order gives direction visit order 0,7,1,6,2,5,3,4.
_BASE_DIRS = [(1, 1), (1, 0), (1, -1), (0, 1)]


def _dir_filter_kernel(x_ref, out_ref, x2_ref, *, radius, H, L):
    """x_ref:  (1, Hp, L+4r) packed & padded plane (B images along lanes).
    out_ref: (1, H, L)      packed filtered plane (lane-dense, mult. of 128).
    x2_ref:  (Hp, L+4r)     VMEM scratch holding the squared plane."""
    r = radius
    n = float(r + 1)
    Ls = L + 2 * r          # width of the shared ray-sum arrays

    # x^2 plane computed once: a single dense, full-ref store.
    xplane = x_ref[0]
    x2_ref[...] = xplane * xplane

    best_score = None
    best_sum = None

    for (yi, xi) in _BASE_DIRS:
        rows0 = 0 if yi != 0 else r
        nrows = H + (r if yi != 0 else 0)

        # Shared ray sums of the +/- pair over a slightly larger extent:
        #   s[p, m] = sum_k x_pad[rows0 + p + yi*k, (m - r) + xi*k]
        # Shifted windows are sliced straight from the refs (sublane offsets
        # + in-bounds lane offsets thanks to the 2r guard columns), seeded
        # with the k = 0 term.
        s1 = None
        s2 = None
        for k in range(r + 1):
            ro = rows0 + yi * k
            co = r + xi * k                  # always in [0, 2r]
            xr = x_ref[0, ro:ro + nrows, co:co + Ls]
            qr = x2_ref[ro:ro + nrows, co:co + Ls]
            if s1 is None:
                s1, s2 = xr, qr
            else:
                s1 = s1 + xr
                s2 = s2 + qr

        # The pair's two directions are two static windows of s1/s2:
        # (-yi,-xi) has the lower direction index and is visited first.
        for (po, cs) in (((r - yi * r) - rows0, r - xi * r),    # (-yi, -xi)
                         (r - rows0, r)):                       # ( yi,  xi)
            t1 = s1[po:po + H, cs:cs + L]
            t2 = s2[po:po + H, cs:cs + L]
            # score = n*(n-1) * variance  -> identical argmin, fewer VALU ops.
            score = n * t2 - t1 * t1
            if best_score is None:
                best_score = score
                best_sum = t1
            else:
                upd = score < best_score
                best_sum = jnp.where(upd, t1, best_sum)
                best_score = jnp.where(upd, score, best_score)

    # Single lane-dense store of the whole packed plane.
    out_ref[0] = best_sum * (1.0 / n)


def net_dir_filter(x, radius):
    """x: (N, 1, H, W) float32  ->  (N, 1, H, W) float32."""
    assert x.ndim == 4 and x.shape[1] == 1, "conv2d weight has 1 input channel"
    N, _, H, W = x.shape
    r = radius
    Hp, Wp = H + 2 * r, W + 2 * r

    # ---- batching heuristic: lane-dense packed planes, keep G >= 2 ----
    LANE_TARGET = 512
    if Wp >= LANE_TARGET:
        B = 1
    else:
        B = max(1, min(N, LANE_TARGET // Wp))
        if N >= 2:
            B = min(B, -(-N // 2))   # keep G >= 2 so both v7x TCs get work
    G = -(-N // B)
    B = -(-N // G)                   # rebalance to minimize batch padding
    Npad = G * B
    L = max(B * Wp, 128)
    L = -(-L // 128) * 128           # hot-array lane width: multiple of 128
    Lin = L + 4 * r                  # input plane carries 2r guards each side

    xs = x[:, 0, :, :].astype(jnp.float32)
    if Npad != N:
        xs = jnp.concatenate(
            [xs, jnp.zeros((Npad - N, H, W), jnp.float32)], axis=0)

    # ---- wrapper-side zero-pad + lane packing (plain XLA) ----
    xpk = jnp.pad(xs, ((0, 0), (r, r), (r, r)))                # (Npad, Hp, Wp)
    xpk = xpk.reshape(G, B, Hp, Wp).transpose(0, 2, 1, 3)       # (G, Hp, B, Wp)
    xpk = xpk.reshape(G, Hp, B * Wp)
    xpk = jnp.pad(xpk, ((0, 0), (0, 0), (2 * r, Lin - 2 * r - B * Wp)))

    kernel = functools.partial(_dir_filter_kernel, radius=r, H=H, L=L)

    # Rough per-step VMEM footprint: double-buffered in/out blocks, the x^2
    # scratch, and headroom for the live ray-sum / best-value planes.
    # TODO(synk): add H-strip tiling with a 2r halo for very large images,
    # budgeted against the 64 MiB per-TensorCore VMEM of v7x.
    lane_bytes = (-(-Lin // 128)) * 128 * 4
    plane_bytes = (-(-Hp // 8)) * 8 * lane_bytes
    out_bytes = (-(-H // 8)) * 8 * L * 4
    vmem_est = 2 * (plane_bytes + out_bytes) + plane_bytes + 10 * plane_bytes
    try:
        cap = int(pltpu.get_tpu_info().vmem_capacity_bytes)
    except Exception:
        cap = 64 * 1024 * 1024       # conservative (v7x) fallback
    vmem_limit = int(min(max(vmem_est, 32 * 1024 * 1024),
                         cap - 8 * 1024 * 1024))

    out = pl.pallas_call(
        kernel,
        out_shape=jax.ShapeDtypeStruct((G, H, L), jnp.float32),
        grid_spec=pltpu.PrefetchScalarGridSpec(
            num_scalar_prefetch=0,
            grid=(G,),
            in_specs=[pl.BlockSpec((1, Hp, Lin), lambda g: (g, 0, 0))],
            out_specs=pl.BlockSpec((1, H, L), lambda g: (g, 0, 0)),
            scratch_shapes=[pltpu.VMEM((Hp, Lin), jnp.float32)],
        ),
        compiler_params=pltpu.CompilerParams(
            dimension_semantics=("parallel",),
            vmem_limit_bytes=vmem_limit,
        ),
    )(xpk)

    # ---- strip frames / unpack the lane-packed result with XLA ----
    res = out[:, :, :B * Wp].reshape(G, H, B, Wp).transpose(0, 2, 1, 3)
    res = res.reshape(Npad, H, Wp)[:N, :, r:r + W]
    return res[:, None, :, :]


def _reference(x, radius):
    """Pure-JAX reference mirroring the PyTorch forward (for a sanity check)."""
    r = radius
    n_pix = r + 1
    N, _, H, W = x.shape
    xs = x[:, 0].astype(jnp.float32)
    xp = jnp.pad(xs, ((0, 0), (r, r), (r, r)))
    x2p = xp * xp

    means, vars_ = [], []
    for (yi, xi) in _DIRS:
        s1 = jnp.zeros((N, H, W), jnp.float32)
        s2 = jnp.zeros((N, H, W), jnp.float32)
        for k in range(r + 1):
            oy, ox = r + yi * k, r + xi * k
            s1 = s1 + xp[:, oy:oy + H, ox:ox + W]
            s2 = s2 + x2p[:, oy:oy + H, ox:ox + W]
        means.append(s1 / n_pix)
        vars_.append((s2 - s1 * s1 / n_pix) / (n_pix - 1))
    mean_x = jnp.stack(means, axis=1)   # (N, 8, H, W)
    var_x = jnp.stack(vars_, axis=1)
    idx = jnp.argmin(var_x, axis=1, keepdims=True)
    return jnp.take_along_axis(mean_x, idx, axis=1)


if __name__ == "__main__":
    radius = 2                          # module __init__ parameter
    N, C, H, W = 8, 1, 16, 16           # conv weight (8,1,2r+1,2r+1) => C == 1

    key = jax.random.PRNGKey(0)
    x = jax.random.normal(key, (N, C, H, W), dtype=jnp.float32)

    out = jax.block_until_ready(net_dir_filter(x, radius))

    ref = _reference(x, radius)
    assert out.shape == (N, 1, H, W)
    assert jnp.allclose(out, ref, atol=1e-5, rtol=1e-5), \
        float(jnp.max(jnp.abs(out - ref)))

    print("KERNEL_OK")
</pallas_src>

<mosaic_0001>
module attributes {stable_mosaic.version = 11 : i64} {
  func.func @_dir_filter_kernel(%arg0: i32, %arg1: memref<1x20x136xf32, #tpu.memory_space<vmem>>, %arg2: memref<1x16x128xf32, #tpu.memory_space<vmem>>, %arg3: memref<20x136xf32, #tpu.memory_space<vmem>>) attributes {dimension_semantics = [#tpu.dimension_semantics<parallel>], iteration_bounds = array<i64: 2>, scalar_prefetch = 0 : i64, scratch_operands = 1 : i64, tpu.core_type = #tpu.core_type<tc>, window_params = [{transform_indices = @transform_0, window_bounds = array<i64: 1, 20, 136>}, {transform_indices = @transform_1, window_bounds = array<i64: 1, 16, 128>}]} {
    %c0 = arith.constant 0 : index
    %c0_0 = arith.constant 0 : index
    %c0_1 = arith.constant 0 : index
    %0 = vector.load %arg1[%c0, %c0_0, %c0_1] : memref<1x20x136xf32, #tpu.memory_space<vmem>>, vector<1x20x136xf32>
    %1 = vector.shape_cast %0 : vector<1x20x136xf32> to vector<20x136xf32>
    %2 = arith.mulf %1, %1 : vector<20x136xf32>
    %c0_2 = arith.constant 0 : index
    %c0_3 = arith.constant 0 : index
    %3 = vector.load %arg3[%c0_2, %c0_3] : memref<20x136xf32, #tpu.memory_space<vmem>>, vector<20x136xf32>
    tpu.vector_store %arg3[%c0_2, %c0_3], %2 {strides = array<i32>} : memref<20x136xf32, #tpu.memory_space<vmem>>, vector<20x136xf32>,
    %c0_4 = arith.constant 0 : index
    %c0_5 = arith.constant 0 : index
    %c2 = arith.constant 2 : index
    %4 = vector.load %arg1[%c0_4, %c0_5, %c2] : memref<1x20x136xf32, #tpu.memory_space<vmem>>, vector<1x18x132xf32>
    %5 = vector.shape_cast %4 : vector<1x18x132xf32> to vector<18x132xf32>
    %c0_6 = arith.constant 0 : index
    %c2_7 = arith.constant 2 : index
    %6 = vector.load %arg3[%c0_6, %c2_7] : memref<20x136xf32, #tpu.memory_space<vmem>>, vector<18x132xf32>
    %c0_8 = arith.constant 0 : index
    %c1 = arith.constant 1 : index
    %c3 = arith.constant 3 : index
    %7 = vector.load %arg1[%c0_8, %c1, %c3] : memref<1x20x136xf32, #tpu.memory_space<vmem>>, vector<1x18x132xf32>
    %8 = vector.shape_cast %7 : vector<1x18x132xf32> to vector<18x132xf32>
    %c1_9 = arith.constant 1 : index
    %c3_10 = arith.constant 3 : index
    %9 = vector.load %arg3[%c1_9, %c3_10] : memref<20x136xf32, #tpu.memory_space<vmem>>, vector<18x132xf32>
    %10 = arith.addf %5, %8 : vector<18x132xf32>
    %11 = arith.addf %6, %9 : vector<18x132xf32>
    %c0_11 = arith.constant 0 : index
    %c2_12 = arith.constant 2 : index
    %c4 = arith.constant 4 : index
    %12 = vector.load %arg1[%c0_11, %c2_12, %c4] : memref<1x20x136xf32, #tpu.memory_space<vmem>>, vector<1x18x132xf32>
    %13 = vector.shape_cast %12 : vector<1x18x132xf32> to vector<18x132xf32>
    %c2_13 = arith.constant 2 : index
    %c4_14 = arith.constant 4 : index
    %14 = vector.load %arg3[%c2_13, %c4_14] : memref<20x136xf32, #tpu.memory_space<vmem>>, vector<18x132xf32>
    %15 = arith.addf %10, %13 : vector<18x132xf32>
    %16 = arith.addf %11, %14 : vector<18x132xf32>
    %17 = vector.extract_strided_slice %15 {offsets = [0, 0], sizes = [16, 128], strides = [1, 1]} : vector<18x132xf32> to vector<16x128xf32>
    %18 = vector.extract_strided_slice %16 {offsets = [0, 0], sizes = [16, 128], strides = [1, 1]} : vector<18x132xf32> to vector<16x128xf32>
    %cst = arith.constant 3.000000e+00 : f32
    %19 = vector.broadcast %cst : f32 to vector<16x128xf32>
    %20 = arith.mulf %19, %18 : vector<16x128xf32>
    %21 = arith.mulf %17, %17 : vector<16x128xf32>
    %22 = arith.subf %20, %21 : vector<16x128xf32>
    %23 = vector.extract_strided_slice %15 {offsets = [2, 2], sizes = [16, 128], strides = [1, 1]} : vector<18x132xf32> to vector<16x128xf32>
    %24 = vector.extract_strided_slice %16 {offsets = [2, 2], sizes = [16, 128], strides = [1, 1]} : vector<18x132xf32> to vector<16x128xf32>
    %cst_15 = arith.constant 3.000000e+00 : f32
    %25 = vector.broadcast %cst_15 : f32 to vector<16x128xf32>
    %26 = arith.mulf %25, %24 : vector<16x128xf32>
    %27 = arith.mulf %23, %23 : vector<16x128xf32>
    %28 = arith.subf %26, %27 : vector<16x128xf32>
    %29 = arith.cmpf olt, %28, %22 : vector<16x128xf32>
    %30 = arith.select %29, %23, %17 : vector<16x128xi1>, vector<16x128xf32>
    %31 = arith.select %29, %28, %22 : vector<16x128xi1>, vector<16x128xf32>
    %c0_16 = arith.constant 0 : index
    %c0_17 = arith.constant 0 : index
    %c2_18 = arith.constant 2 : index
    %32 = vector.load %arg1[%c0_16, %c0_17, %c2_18] : memref<1x20x136xf32, #tpu.memory_space<vmem>>, vector<1x18x132xf32>
    %33 = vector.shape_cast %32 : vector<1x18x132xf32> to vector<18x132xf32>
    %c0_19 = arith.constant 0 : index
    %c2_20 = arith.constant 2 : index
    %34 = vector.load %arg3[%c0_19, %c2_20] : memref<20x136xf32, #tpu.memory_space<vmem>>, vector<18x132xf32>
    %c0_21 = arith.constant 0 : index
    %c1_22 = arith.constant 1 : index
    %c2_23 = arith.constant 2 : index
    %35 = vector.load %arg1[%c0_21, %c1_22, %c2_23] : memref<1x20x136xf32, #tpu.memory_space<vmem>>, vector<1x18x132xf32>
    %36 = vector.shape_cast %35 : vector<1x18x132xf32> to vector<18x132xf32>
    %c1_24 = arith.constant 1 : index
    %c2_25 = arith.constant 2 : index
    %37 = vector.load %arg3[%c1_24, %c2_25] : memref<20x136xf32, #tpu.memory_space<vmem>>, vector<18x132xf32>
    %38 = arith.addf %33, %36 : vector<18x132xf32>
    %39 = arith.addf %34, %37 : vector<18x132xf32>
    %c0_26 = arith.constant 0 : index
    %c2_27 = arith.constant 2 : index
    %c2_28 = arith.constant 2 : index
    %40 = vector.load %arg1[%c0_26, %c2_27, %c2_28] : memref<1x20x136xf32, #tpu.memory_space<vmem>>, vector<1x18x132xf32>
    %41 = vector.shape_cast %40 : vector<1x18x132xf32> to vector<18x132xf32>
    %c2_29 = arith.constant 2 : index
    %c2_30 = arith.constant 2 : index
    %42 = vector.load %arg3[%c2_29, %c2_30] : memref<20x136xf32, #tpu.memory_space<vmem>>, vector<18x132xf32>
    %43 = arith.addf %38, %41 : vector<18x132xf32>
    %44 = arith.addf %39, %42 : vector<18x132xf32>
    %45 = vector.extract_strided_slice %43 {offsets = [0, 2], sizes = [16, 128], strides = [1, 1]} : vector<18x132xf32> to vector<16x128xf32>
    %46 = vector.extract_strided_slice %44 {offsets = [0, 2], sizes = [16, 128], strides = [1, 1]} : vector<18x132xf32> to vector<16x128xf32>
    %cst_31 = arith.constant 3.000000e+00 : f32
    %47 = vector.broadcast %cst_31 : f32 to vector<16x128xf32>
    %48 = arith.mulf %47, %46 : vector<16x128xf32>
    %49 = arith.mulf %45, %45 : vector<16x128xf32>
    %50 = arith.subf %48, %49 : vector<16x128xf32>
    %51 = arith.cmpf olt, %50, %31 : vector<16x128xf32>
    %52 = arith.select %51, %45, %30 : vector<16x128xi1>, vector<16x128xf32>
    %53 = arith.select %51, %50, %31 : vector<16x128xi1>, vector<16x128xf32>
    %54 = vector.extract_strided_slice %43 {offsets = [2, 2], sizes = [16, 128], strides = [1, 1]} : vector<18x132xf32> to vector<16x128xf32>
    %55 = vector.extract_strided_slice %44 {offsets = [2, 2], sizes = [16, 128], strides = [1, 1]} : vector<18x132xf32> to vector<16x128xf32>
    %cst_32 = arith.constant 3.000000e+00 : f32
    %56 = vector.broadcast %cst_32 : f32 to vector<16x128xf32>
    %57 = arith.mulf %56, %55 : vector<16x128xf32>
    %58 = arith.mulf %54, %54 : vector<16x128xf32>
    %59 = arith.subf %57, %58 : vector<16x128xf32>
    %60 = arith.cmpf olt, %59, %53 : vector<16x128xf32>
    %61 = arith.select %60, %54, %52 : vector<16x128xi1>, vector<16x128xf32>
    %62 = arith.select %60, %59, %53 : vector<16x128xi1>, vector<16x128xf32>
    %c0_33 = arith.constant 0 : index
    %c0_34 = arith.constant 0 : index
    %c2_35 = arith.constant 2 : index
    %63 = vector.load %arg1[%c0_33, %c0_34, %c2_35] : memref<1x20x136xf32, #tpu.memory_space<vmem>>, vector<1x18x132xf32>
    %64 = vector.shape_cast %63 : vector<1x18x132xf32> to vector<18x132xf32>
    %c0_36 = arith.constant 0 : index
    %c2_37 = arith.constant 2 : index
    %65 = vector.load %arg3[%c0_36, %c2_37] : memref<20x136xf32, #tpu.memory_space<vmem>>, vector<18x132xf32>
    %c0_38 = arith.constant 0 : index
    %c1_39 = arith.constant 1 : index
    %c1_40 = arith.constant 1 : index
    %66 = vector.load %arg1[%c0_38, %c1_39, %c1_40] : memref<1x20x136xf32, #tpu.memory_space<vmem>>, vector<1x18x132xf32>
    %67 = vector.shape_cast %66 : vector<1x18x132xf32> to vector<18x132xf32>
    %c1_41 = arith.constant 1 : index
    %c1_42 = arith.constant 1 : index
    %68 = vector.load %arg3[%c1_41, %c1_42] : memref<20x136xf32, #tpu.memory_space<vmem>>, vector<18x132xf32>
    %69 = arith.addf %64, %67 : vector<18x132xf32>
    %70 = arith.addf %65, %68 : vector<18x132xf32>
    %c0_43 = arith.constant 0 : index
    %c2_44 = arith.constant 2 : index
    %c0_45 = arith.constant 0 : index
    %71 = vector.load %arg1[%c0_43, %c2_44, %c0_45] : memref<1x20x136xf32, #tpu.memory_space<vmem>>, vector<1x18x132xf32>
    %72 = vector.shape_cast %71 : vector<1x18x132xf32> to vector<18x132xf32>
    %c2_46 = arith.constant 2 : index
    %c0_47 = arith.constant 0 : index
    %73 = vector.load %arg3[%c2_46, %c0_47] : memref<20x136xf32, #tpu.memory_space<vmem>>, vector<18x132xf32>
    %74 = arith.addf %69, %72 : vector<18x132xf32>
    %75 = arith.addf %70, %73 : vector<18x132xf32>
    %76 = vector.extract_strided_slice %74 {offsets = [0, 4], sizes = [16, 128], strides = [1, 1]} : vector<18x132xf32> to vector<16x128xf32>
    %77 = vector.extract_strided_slice %75 {offsets = [0, 4], sizes = [16, 128], strides = [1, 1]} : vector<18x132xf32> to vector<16x128xf32>
    %cst_48 = arith.constant 3.000000e+00 : f32
    %78 = vector.broadcast %cst_48 : f32 to vector<16x128xf32>
    %79 = arith.mulf %78, %77 : vector<16x128xf32>
    %80 = arith.mulf %76, %76 : vector<16x128xf32>
    %81 = arith.subf %79, %80 : vector<16x128xf32>
    %82 = arith.cmpf olt, %81, %62 : vector<16x128xf32>
    %83 = arith.select %82, %76, %61 : vector<16x128xi1>, vector<16x128xf32>
    %84 = arith.select %82, %81, %62 : vector<16x128xi1>, vector<16x128xf32>
    %85 = vector.extract_strided_slice %74 {offsets = [2, 2], sizes = [16, 128], strides = [1, 1]} : vector<18x132xf32> to vector<16x128xf32>
    %86 = vector.extract_strided_slice %75 {offsets = [2, 2], sizes = [16, 128], strides = [1, 1]} : vector<18x132xf32> to vector<16x128xf32>
    %cst_49 = arith.constant 3.000000e+00 : f32
    %87 = vector.broadcast %cst_49 : f32 to vector<16x128xf32>
    %88 = arith.mulf %87, %86 : vector<16x128xf32>
    %89 = arith.mulf %85, %85 : vector<16x128xf32>
    %90 = arith.subf %88, %89 : vector<16x128xf32>
    %91 = arith.cmpf olt, %90, %84 : vector<16x128xf32>
    %92 = arith.select %91, %85, %83 : vector<16x128xi1>, vector<16x128xf32>
    %93 = arith.select %91, %90, %84 : vector<16x128xi1>, vector<16x128xf32>
    %c0_50 = arith.constant 0 : index
    %c2_51 = arith.constant 2 : index
    %c2_52 = arith.constant 2 : index
    %94 = vector.load %arg1[%c0_50, %c2_51, %c2_52] : memref<1x20x136xf32, #tpu.memory_space<vmem>>, vector<1x16x132xf32>
    %95 = vector.shape_cast %94 : vector<1x16x132xf32> to vector<16x132xf32>
    %c2_53 = arith.constant 2 : index
    %c2_54 = arith.constant 2 : index
    %96 = vector.load %arg3[%c2_53, %c2_54] : memref<20x136xf32, #tpu.memory_space<vmem>>, vector<16x132xf32>
    %c0_55 = arith.constant 0 : index
    %c2_56 = arith.constant 2 : index
    %c3_57 = arith.constant 3 : index
    %97 = vector.load %arg1[%c0_55, %c2_56, %c3_57] : memref<1x20x136xf32, #tpu.memory_space<vmem>>, vector<1x16x132xf32>
    %98 = vector.shape_cast %97 : vector<1x16x132xf32> to vector<16x132xf32>
    %c2_58 = arith.constant 2 : index
    %c3_59 = arith.constant 3 : index
    %99 = vector.load %arg3[%c2_58, %c3_59] : memref<20x136xf32, #tpu.memory_space<vmem>>, vector<16x132xf32>
    %100 = arith.addf %95, %98 : vector<16x132xf32>
    %101 = arith.addf %96, %99 : vector<16x132xf32>
    %c0_60 = arith.constant 0 : index
    %c2_61 = arith.constant 2 : index
    %c4_62 = arith.constant 4 : index
    %102 = vector.load %arg1[%c0_60, %c2_61, %c4_62] : memref<1x20x136xf32, #tpu.memory_space<vmem>>, vector<1x16x132xf32>
    %103 = vector.shape_cast %102 : vector<1x16x132xf32> to vector<16x132xf32>
    %c2_63 = arith.constant 2 : index
    %c4_64 = arith.constant 4 : index
    %104 = vector.load %arg3[%c2_63, %c4_64] : memref<20x136xf32, #tpu.memory_space<vmem>>, vector<16x132xf32>
    %105 = arith.addf %100, %103 : vector<16x132xf32>
    %106 = arith.addf %101, %104 : vector<16x132xf32>
    %107 = vector.extract_strided_slice %105 {offsets = [0, 0], sizes = [16, 128], strides = [1, 1]} : vector<16x132xf32> to vector<16x128xf32>
    %108 = vector.extract_strided_slice %106 {offsets = [0, 0], sizes = [16, 128], strides = [1, 1]} : vector<16x132xf32> to vector<16x128xf32>
    %cst_65 = arith.constant 3.000000e+00 : f32
    %109 = vector.broadcast %cst_65 : f32 to vector<16x128xf32>
    %110 = arith.mulf %109, %108 : vector<16x128xf32>
    %111 = arith.mulf %107, %107 : vector<16x128xf32>
    %112 = arith.subf %110, %111 : vector<16x128xf32>
    %113 = arith.cmpf olt, %112, %93 : vector<16x128xf32>
    %114 = arith.select %113, %107, %92 : vector<16x128xi1>, vector<16x128xf32>
    %115 = arith.select %113, %112, %93 : vector<16x128xi1>, vector<16x128xf32>
    %116 = vector.extract_strided_slice %105 {offsets = [0, 2], sizes = [16, 128], strides = [1, 1]} : vector<16x132xf32> to vector<16x128xf32>
    %117 = vector.extract_strided_slice %106 {offsets = [0, 2], sizes = [16, 128], strides = [1, 1]} : vector<16x132xf32> to vector<16x128xf32>
    %cst_66 = arith.constant 3.000000e+00 : f32
    %118 = vector.broadcast %cst_66 : f32 to vector<16x128xf32>
    %119 = arith.mulf %118, %117 : vector<16x128xf32>
    %120 = arith.mulf %116, %116 : vector<16x128xf32>
    %121 = arith.subf %119, %120 : vector<16x128xf32>
    %122 = arith.cmpf olt, %121, %115 : vector<16x128xf32>
    %123 = arith.select %122, %116, %114 : vector<16x128xi1>, vector<16x128xf32>
    %cst_67 = arith.constant 0.333333343 : f32
    %124 = vector.broadcast %cst_67 : f32 to vector<16x128xf32>
    %125 = arith.mulf %123, %124 : vector<16x128xf32>
    %c0_68 = arith.constant 0 : index
    %c0_69 = arith.constant 0 : index
    %c0_70 = arith.constant 0 : index
    %126 = vector.load %arg2[%c0_68, %c0_69, %c0_70] : memref<1x16x128xf32, #tpu.memory_space<vmem>>, vector<1x16x128xf32>
    %127 = vector.shape_cast %126 : vector<1x16x128xf32> to vector<16x128xf32>
    %128 = vector.shape_cast %125 : vector<16x128xf32> to vector<1x16x128xf32>
    tpu.vector_store %arg2[%c0_68, %c0_69, %c0_70], %128 {strides = array<i32>} : memref<1x16x128xf32, #tpu.memory_space<vmem>>, vector<1x16x128xf32>,
    return
  }
  func.func @transform_0(%arg0: i32) -> (i32, i32, i32) {
    %c0_i32 = arith.constant 0 : i32
    %c0_i32_0 = arith.constant 0 : i32
    %c0_i32_1 = arith.constant 0 : i32
    return %arg0, %c0_i32, %c0_i32_0 : i32, i32, i32
  }
  func.func @transform_1(%arg0: i32) -> (i32, i32, i32) {
    %c0_i32 = arith.constant 0 : i32
    %c0_i32_0 = arith.constant 0 : i32
    %c0_i32_1 = arith.constant 0 : i32
    return %arg0, %c0_i32, %c0_i32_0 : i32, i32, i32
  }
}

</mosaic_0001>

<bundles_post_ra>
// kernel: tpu_custom_call.1
= control target key start
LH: loop header
LB: loop body
LE: loop exit
PB: predicated region body
PF: predicated region fallthrough
CT: control target
= control target key end

     0   :  { %6 = vsyncpa [#allocation4], 0  ;;  %s2404_s0 = inlined_call_operand.vmem [shape: f32[2,20,136], index: 0, kind: input, shape index: {}]   ;;  %s2405_s1 = inlined_call_operand.hbm [shape: f32[2,16,128], index: 1, kind: output, shape index: {}]  }
   0x1   :  { %8 = vsyncpa [#allocation4 + $0x1], 0  ;;  %s1409_s6 = smov 0   ;;  %s1411_s7 = smov 0  }
   0x2   :  { %s1413_s8 = smov 0   ;;  %s1415_s9 = smov 0  }
   0x3 LB: > { %s1430_s10 = sadd.s32 4294967295, %s1389_s9   ;;  %s1260_s11 = sadd.s32 4294967294, %s1389_s9   ;;  %s1389_s9 = sphi %s1415_s9, %s2437_s9   ;;  %s1385_s8 = sphi %s1413_s8, %s2436_s8   ;;  %s1381_s7 = sphi %s1411_s7, %s2435_s7   ;;  %s1377_s6 = sphi %s1409_s6, %s2434_s6  }
   0x4   : > { %s1434_s12 = sadd.s32 1, %s1389_s9   ;;  %s47_s13 = sadd.s32 1, %s1385_s8 }
   0x5   : > { %s44_s14 = ssub.s32 %s1389_s9, %s1434_s12  ;;  %p57_p0 = scmp.ne.s32.totalorder %s1385_s8, %s1381_s7 }
   0x6   : > { %p45_p1 = scmp.eq.s32.totalorder %s44_s14, 0  ;;  %p58_p2 = scmp.eq.s32.totalorder %s1430_s10, 1 }
   0x7   : > { %p63_p3 = scmp.ne.s32.totalorder %s1381_s7, %s1377_s6  ;;  %p64_p4 = scmp.eq.s32.totalorder %s1260_s11, 1 }
   0x8   : > { %s1445_s15 = scalar_select %p45_p1, %s1385_s8, %s47_s13  }
   0x9   : > { %p1447_p5 = por %p58_p2, %p57_p0  ;;  %p1451_p6 = por %p64_p4, %p63_p3 }
   0xa   : > { %p1263_p7 = scmp.ge.s32.totalorder %s1389_s9, 1  ;;  %p90_p8 = scmp.lt.s32.totalorder %s1389_s9, 3 }
   0xc   : > { %p91_p9 = pnand %p1263_p7, %p90_p8 }
   0xe   : > { %94 = sbr.rel (%p91_p9) target bundleno = 956 (0x3bc), region = 24 }
  0x15   : > { %p110_p10 = scmp.lt.s32.totalorder %s1430_s10, 1  ;;  %vm161_vm0 = vcmask 1046528   ;;  %vm128_vm1 = vcmask 64512   ;;  %s1391_s23 = smov 127   ;;  %vm255_vm2 = vcmask 1045504   ;;  %vm133_vm3 = vcmask 60416  }
  0x16   : > { %s1392_s24 = smov 126   ;;  %vm184_vm4 = vcmask 1039360   ;;  %vm278_vm5 = vcmask 1031168   ;;  %s1393_s25 = smov 2   ;;  %vm357_vm6 = vcmask 1041408   ;;  %vm376_vm7 = vcmask 15360  }
  0x17   : > { %s111_s18 = scalar_select %p110_p10, %s1430_s10, 1 }
  0x18   : > { %s1394_s26 = smov 1   ;;  %s1395_s27 = smov 124  }
  0x19   : > { %s1272_s19 = smul.u32 48, %s111_s18  ;;  %s107_s28 = sand.u32 1, %s1381_s7  }
  0x1a   : > { %s1264_s29 = sshll.u32 %s107_s28, 4  ;;  %s1271_s3 = sshll.u32 %s1430_s10, 8 }
  0x1b   : > { %s1462_s22 = scalar_lea.vmem %s2404_s0, %s1272_s19  ;;  %s109_s30 = scalar_lea.vmem [#allocation3], %s1264_s29 }
  0x1c   : > { %v1465_v0 = vld [vmem:[%s1462_s22 + $0x10] sm:$0xff]  ;;  %v149_v1 = vld [vmem:[%s1462_s22 + $0x20] sm:$0x7]  ;;  %v1473_v6 = vld [vmem:[%s1462_s22 + $0x18] sm:$0xff]  ;;  %s1198_s2 = sshll.u32 %s109_s30, 4  ;;  %s2360_s11 = scalar_lea.hbm %s2405_s1, %s1271_s3  ;;  %s2355_s2 = int_to_ptr.vmem [resolvable:$true] %s1198_s2 }
  0x1d   : > { %v147_v2 = vld [vmem:[%s1462_s22] sm:$0xfe]  ;;  %v163_v3 = vrot.slane %v1465_v0, 1  ;;  %v1470_v4 = vrot.slane %v149_v1, 1  ;;  %v1476_v7 = vld [vmem:[%s1462_s22 + $0x8] sm:$0xff]  ;;  %v1480_v8 = vmul.f32 %v1465_v0, %v1465_v0  ;;  %v166_v10 = vrot.slane %v1473_v6, 1 }
  0x1e   : > { %v162_v5 = vrot.slane %v147_v2, 1  ;;  %2420 = vst [vmem:[#allocation6_spill] sm:$0xff] %v1476_v7  ;;  %v150_v9 = vld [vmem:[%s1462_s22 + $0x28] sm:$0x7]  ;;  %v122_v12 = vmul.f32 %v1476_v7, %v1476_v7  ;;  %v124_v13 = vmul.f32 %v1473_v6, %v1473_v6  ;;  %v1502_v19 = vld [vmem:[%s1462_s22] sm:$0xfc] }
  0x1f   : > { %v148_v11 = vld [vmem:[%s1462_s22 + $0x8] sm:$0xfe]  ;;  %v1491_v14 = vsel %vm161_vm0, %v163_v3, %v1470_v4  ;;  %v1496_v16 = vrot.slane %v150_v9, 1  ;;  %130 = vst [vmem:[#allocation2 + $0x10] sm:$0xff] %v1480_v8  ;;  %v1510_v20 = vld [vmem:[%s1462_s22] sm:$0xff]  ;;  %v260_v22 = vrot.slane %v1473_v6, 2 }
  0x20   : > { %v1494_v15 = vsel %vm161_vm0, %v162_v5, %v163_v3  ;;  %v165_v17 = vrot.slane %v148_v11, 1  ;;  %v1499_v18 = vld [vmem:[%s1462_s22 + $0x8] sm:$0xfc]  ;;  %176 = vrot.lane.b32.xlu1 %v1491_v14, %s1391_s23  ;;  %129 = vst.msk [vmem:[#allocation2 + $0x8] sm:$0xff] %vm128_vm1, %v122_v12  ;;  %131 = vst.msk [vmem:[#allocation2 + $0x18] sm:$0xff] %vm128_vm1, %v124_v13  ;;  %v256_v25 = vrot.slane %v1502_v19, 2  ;;  %v1531_v31 = vmul.f32 %v1510_v20, %v1510_v20 }
  0x21   : > { %172 = vrot.lane.b32.xlu0 %v1494_v15, %s1391_s23  ;;  %v259_v21 = vrot.slane %v1499_v18, 2  ;;  %v1518_v23 = vsel %vm161_vm0, %v166_v10, %v1496_v16  ;;  %v257_v26 = vrot.slane %v1465_v0, 2  ;;  %v246_v27 = vld [vmem:[%s1462_s22 + $0x28] sm:$0xf]  ;;  %v245_v28 = vld [vmem:[%s1462_s22 + $0x20] sm:$0xf] }
  0x22   : > { %v1521_v24 = vsel %vm161_vm0, %v165_v17, %v166_v10  ;;  %v120_v29 = vld [vmem:[%s1462_s22 + $0x28] sm:$0xf]  ;;  %v119_v30 = vld [vmem:[%s1462_s22 + $0x20] sm:$0xf]  ;;  %v1540_v33 = vrot.slane %v246_v27, 2  ;;  %v1545_v35 = vrot.slane %v245_v28, 2 }
  0x23   : > { %v1538_v32 = vsel %vm255_vm2, %v259_v21, %v260_v22  ;;  %v1543_v34 = vsel %vm255_vm2, %v256_v25, %v257_v26  ;;  %127 = vst [vmem:[#allocation2] sm:$0xff] %v1531_v31  ;;  %v126_v36 = vmul.f32 %v120_v29, %v120_v29  ;;  %v125_v37 = vmul.f32 %v119_v30, %v119_v30  ;;  %s2363_s13 = scalar_lea.sflag [#allocation4], %s107_s28  ;;  %s1327_s14 = scalar_lea.vmem %s2355_s2, 256 }
  0x24   : > { %178 = vrot.lane.b32.xlu1 %v1518_v23, %s1391_s23  ;;  %v1556_v40 = vsel %vm255_vm2, %v260_v22, %v1540_v33  ;;  %v1560_v41 = vsel %vm255_vm2, %v257_v26, %v1545_v35  ;;  %v207_v44 = vrot.slane %v1480_v8, 1  ;;  %v299_v56 = vrot.slane %v1480_v8, 2  ;;  %p1328_p11 = scmp.ne.s32.totalorder %s2355_s2, %s1327_s14  ;;  %s1396_s10 = smov [#allocation3]  }
  0x25   : > { %174 = vrot.lane.b32.xlu0 %v1521_v24, %s1391_s23  ;;  %134 = vst.msk [vmem:[#allocation2 + $0x28] sm:$0xf] %vm133_vm3, %v126_v36  ;;  %132 = vst [vmem:[#allocation2 + $0x20] sm:$0xf] %v125_v37  ;;  %s1331_s18 = sshll.u32 %s1396_s10, 4  ;;  %s1332_s18 = int_to_ptr.vmem [resolvable:$false] %s1331_s18 }
  0x26   : > { %p1329_p12 = pnand %p1328_p11, %p1447_p5  ;;  %s1333_s19 = scalar_lea.vmem %s1332_s18, 512 }
  0x27   : > { %v1548_v38 = vld [vmem:[#allocation2 + $0x18] sm:$0xff]  ;;  %v152_v39 = vld [vmem:[#allocation2 + $0x8] sm:$0xfe]  ;;  %p1334_p0 = scmp.lt.s32.totalorder %s2355_s2, %s1332_s18  ;;  %p1335_p1 = scmp.lt.s32.totalorder %s1333_s19, %s1327_s14 }
  0x28   : > { %2421 = vst [vmem:[#allocation7_spill] sm:$0xff] %v1548_v38  ;;  %268 = vrot.lane.b32.xlu1 %v1538_v32, %s1392_s24  ;;  %v209_v42 = vrot.slane %v152_v39, 1  ;;  %v210_v43 = vrot.slane %v1548_v38, 1  ;;  %v1571_v48 = vld [vmem:[#allocation2 + $0x8] sm:$0xfc]  ;;  %v302_v55 = vrot.slane %v1548_v38, 2  ;;  %p1330_p13 = pneg %p1329_p12 }
  0x29   : > { %266 = vrot.lane.b32.xlu0 %v1543_v34, %s1392_s24  ;;  %2422 = vst [vmem:[#allocation8_spill] sm:$0xff] %v1571_v48  ;;  %v301_v59 = vrot.slane %v1571_v48, 2  ;;  %v444_v48 = vadd.f32 %v1518_v23, %v1473_v6  ;;  %p1336_p2 = por %p1335_p1, %p1334_p0 }
  0x2a   : > { %v151_v45 = vld [vmem:[#allocation2] sm:$0xfe]  ;;  %v1569_v46 = vsel %vm161_vm0, %v209_v42, %v210_v43 }
  0x2b   : > { %v206_v47 = vrot.slane %v151_v45, 1  ;;  %v1573_v51 = vld [vmem:[#allocation2] sm:$0xfc]  ;;  %v1603_v63 = vsel %vm255_vm2, %v301_v59, %v302_v55  ;;  %p1337_p3 = pnand %p1336_p2, %p1330_p13 }
  0x2c   : > { %272 = vrot.lane.b32.xlu1 %v1556_v40, %s1392_s24  ;;  %v154_v49 = vld [vmem:[#allocation2 + $0x28] sm:$0x7]  ;;  %v153_v50 = vld [vmem:[#allocation2 + $0x20] sm:$0x7]  ;;  %2423 = vst [vmem:[#allocation9_spill] sm:$0xff] %v1573_v51  ;;  %v298_v60 = vrot.slane %v1573_v51, 2 }
  0x2d   : > { %270 = vrot.lane.b32.xlu0 %v1560_v41, %s1392_s24  ;;  %v1576_v52 = vsel %vm161_vm0, %v206_v47, %v207_v44  ;;  %v1578_v53 = vrot.slane %v154_v49, 1  ;;  %v1580_v54 = vrot.slane %v153_v50, 1  ;;  %v250_v61 = vld [vmem:[#allocation2 + $0x28] sm:$0xf]  ;;  %v249_v62 = vld [vmem:[#allocation2 + $0x20] sm:$0xf] }
  0x2e   : > { %v1606_v1 = vsel %vm255_vm2, %v298_v60, %v299_v56  ;;  %v1608_v2 = vrot.slane %v250_v61, 2  ;;  %v1610_v3 = vrot.slane %v249_v62, 2 }
  0x2f   : > { %v1590_v57 = vsel %vm161_vm0, %v210_v43, %v1578_v53  ;;  %v1594_v58 = vsel %vm161_vm0, %v207_v44, %v1580_v54  ;;  %v1656_v44 = vld [vmem:[#allocation2 + $0x8] sm:$0xff] }
  0x30   : > { %218 = vrot.lane.b32.xlu1 %v1569_v46, %s1391_s23  ;;  %v1618_v5 = vsel %vm255_vm2, %v302_v55, %v1608_v2  ;;  %v1622_v9 = vsel %vm255_vm2, %v299_v56, %v1610_v3  ;;  %2424 = vst [vmem:[#allocation10_spill] sm:$0xff] %v1656_v44 }
  0x31   : > { %216 = vrot.lane.b32.xlu0 %v1576_v52, %s1391_s23 }
  0x34   : > { %222 = vrot.lane.b32.xlu1 %v1590_v57, %s1391_s23 }
  0x35   : > { %220 = vrot.lane.b32.xlu0 %v1594_v58, %s1391_s23 }
  0x38   : > { %310 = vrot.lane.b32.xlu1 %v1603_v63, %s1392_s24 }
  0x39   : > { %308 = vrot.lane.b32.xlu0 %v1606_v1, %s1392_s24 }
  0x3c   : > { %314 = vrot.lane.b32.xlu1 %v1618_v5, %s1392_s24 }
  0x3d   : > { %312 = vrot.lane.b32.xlu0 %v1622_v9, %s1392_s24 }
  0x40   : > { %182 = vrot.lane.b32.xlu1 %v1496_v16, %s1391_s23 }
  0x41   : > { %180 = vrot.lane.b32.xlu0 %v1470_v4, %s1391_s23 }
  0x44   : > { %226 = vrot.lane.b32.xlu1 %v1578_v53, %s1391_s23 }
  0x45   : > { %224 = vrot.lane.b32.xlu0 %v1580_v54, %s1391_s23 }
  0x48   : > { %276 = vrot.lane.b32.xlu1 %v1540_v33, %s1392_s24 }
  0x49   : > { %274 = vrot.lane.b32.xlu0 %v1545_v35, %s1392_s24 }
  0x4c   : > { %318 = vrot.lane.b32.xlu1 %v1608_v2, %s1392_s24 }
  0x4d   : > { %316 = vrot.lane.b32.xlu0 %v1610_v3, %s1392_s24 }
  0x92   : > { %v177_v10 = vpop.permute.xlu1 %176 }
  0x93   : > { %v173_v11 = vpop.permute.xlu0 %172 }
  0x96   : > { %v179_v12 = vpop.permute.xlu1 %178 }
  0x97   : > { %v175_v13 = vpop.permute.xlu0 %174  ;;  %v186_v50 = vsel %vm184_vm4, %v177_v10, %v179_v12  ;;  %v197_v56 = vadd.f32 %v179_v12, %v1473_v6 }
  0x98   : > { %v185_v17 = vsel %vm184_vm4, %v173_v11, %v175_v13  ;;  %v195_v21 = vadd.f32 %v175_v13, %v1476_v7 }
  0x99   : > { %v194_v22 = vadd.f32 %v185_v17, %v1510_v20 }
  0x9a   : > { %v269_v25 = vpop.permute.xlu1 %268 }
  0x9b   : > { %v267_v26 = vpop.permute.xlu0 %266  ;;  %v1647_v27 = vadd.f32 %v269_v25, %v195_v21  ;;  %v196_v21 = vadd.f32 %v186_v50, %v1465_v0 }
  0x9c   : > { %v279_v28 = vsel %vm278_vm5, %v267_v26, %v269_v25 }
  0x9d   : > { %v1650_v29 = vadd.f32 %v279_v28, %v194_v22  ;;  %v397_v30 = vrot.slane %v1647_v27, 6  ;;  %v340_v12 = vmul.f32 %v1647_v27, %v1647_v27 }
  0x9e   : > { %v273_v36 = vpop.permute.xlu1 %272 }
  0x9f   : > { %v271_v37 = vpop.permute.xlu0 %270  ;;  %v396_v39 = vrot.slane %v1650_v29, 6  ;;  %404 = vrot.lane.b32.xlu1 %v397_v30, %s1393_s25  ;;  %v1667_v25 = vadd.f32 %v273_v36, %v197_v56 }
  0xa0   : > { %v280_v62 = vsel %vm278_vm5, %v271_v37, %v273_v36 }
  0xa1   : > { %402 = vrot.lane.b32.xlu0 %v396_v39, %s1393_s25  ;;  %v1672_v28 = vadd.f32 %v280_v62, %v196_v21 }
  0xa2   : > { %v219_v42 = vpop.permute.xlu1 %218 }
  0xa3   : > { %v217_v43 = vpop.permute.xlu0 %216  ;;  %v238_v55 = vadd.f32 %v219_v42, %v1656_v44  ;;  %v341_v62 = vmul.f32 %v1672_v28, %v1672_v28 }
  0xa4   : > { %v228_v49 = vsel %vm184_vm4, %v217_v43, %v219_v42  ;;  %v339_v42 = vmul.f32 %v1650_v29, %v1650_v29 }
  0xa5   : > { %v237_v59 = vadd.f32 %v228_v49, %v1531_v31 }
  0xa6   : > { %v223_v45 = vpop.permute.xlu1 %222 }
  0xa7   : > { %v221_v47 = vpop.permute.xlu0 %220  ;;  %v240_v10 = vadd.f32 %v223_v45, %v1548_v38 }
  0xa8   : > { %v229_v11 = vsel %vm184_vm4, %v221_v47, %v223_v45 }
  0xa9   : > { %v239_v37 = vadd.f32 %v229_v11, %v1480_v8 }
  0xaa   : > { %v311_v60 = vpop.permute.xlu1 %310 }
  0xab   : > { %v309_v61 = vpop.permute.xlu0 %308  ;;  %v330_v13 = vadd.f32 %v311_v60, %v238_v55 }
  0xac   : > { %v320_v17 = vsel %vm278_vm5, %v309_v61, %v311_v60 }
  0xad   : > { %v329_v22 = vadd.f32 %v320_v17, %v237_v59  ;;  %v336_v26 = vmul.f32 3.0, %v330_v13  ;;  %v342_v59 = vmul.f32 %v1667_v25, %v1667_v25 }
  0xae   : > { %v315_v47 = vpop.permute.xlu1 %314 }
  0xaf   : > { %v335_v43 = vmul.f32 3.0, %v329_v22  ;;  %v313_v49 = vpop.permute.xlu0 %312  ;;  %v1677_v50 = vsub.f32 %v336_v26, %v340_v12  ;;  %v332_v36 = vadd.f32 %v315_v47, %v240_v10  ;;  %v400_v26 = vrot.slane %v1667_v25, 6 }
  0xb0   : > { %v321_v55 = vsel %vm278_vm5, %v313_v49, %v315_v47 }
  0xb1   : > { %v1680_v45 = vsub.f32 %v335_v43, %v339_v42  ;;  %v331_v56 = vadd.f32 %v321_v55, %v239_v37  ;;  %v338_v60 = vmul.f32 3.0, %v332_v36  ;;  %v359_v61 = vrot.slane %v1677_v50, 6 }
  0xb2   : > { %v398_v42 = vrot.slane %v1672_v28, 6  ;;  %v401_v43 = vsel %vm357_vm6, %v397_v30, %v400_v26  ;;  %v183_v30 = vpop.permute.xlu1 %182 }
  0xb3   : > { %v337_v11 = vmul.f32 3.0, %v331_v56  ;;  %v358_v13 = vrot.slane %v1680_v45, 6  ;;  %v1688_v17 = vsub.f32 %v338_v60, %v342_v59  ;;  %366 = vrot.lane.b32.xlu1 %v359_v61, %s1393_s25  ;;  %v1743_v59 = vld [vmem:[%s1462_s22 + $0x20] sm:$0x3] }
  0xb4   : > { %v399_v47 = vsel %vm357_vm6, %v396_v39, %v398_v42  ;;  %v181_v39 = vpop.permute.xlu0 %180 }
  0xb5   : > { %v1691_v21 = vsub.f32 %v337_v11, %v341_v62  ;;  %364 = vrot.lane.b32.xlu0 %v358_v13, %s1393_s25  ;;  %v362_v22 = vrot.slane %v1688_v17, 6  ;;  %v187_v60 = vsel %vm184_vm4, %v181_v39, %v183_v30  ;;  %v1750_v11 = vld [vmem:[%s1462_s22 + $0x28] sm:$0x3]  ;;  %v443_v39 = vadd.f32 %v1491_v14, %v1465_v0 }
  0xb6   : > { %v227_v49 = vpop.permute.xlu1 %226 }
  0xb7   : > { %v360_v10 = vrot.slane %v1691_v21, 6  ;;  %374 = vrot.lane.b32.xlu1 %v362_v22, %s1393_s25  ;;  %v363_v12 = vsel %vm357_vm6, %v359_v61, %v362_v22  ;;  %v1746_v61 = vld [vmem:[#allocation2 + $0x20] sm:$0x3] }
  0xb8   : > { %v225_v36 = vpop.permute.xlu0 %224  ;;  %2425 = vst [vmem:[#allocation11_spill] sm:$0xff] %v1746_v61 }
  0xb9   : > { %372 = vrot.lane.b32.xlu0 %v360_v10, %s1393_s25  ;;  %v361_v37 = vsel %vm357_vm6, %v358_v13, %v360_v10  ;;  %v230_v62 = vsel %vm184_vm4, %v225_v36, %v227_v49  ;;  %v1752_v13 = vld [vmem:[#allocation2 + $0x28] sm:$0x3]  ;;  %v441_v36 = vadd.f32 %v1494_v15, %v1510_v20 }
  0xba   : > { %v277_v55 = vpop.permute.xlu1 %276  ;;  %2426 = vst [vmem:[#allocation12_spill] sm:$0xff] %v1752_v13 }
  0xbb   : > { %370 = vrot.lane.b32.xlu1 %v363_v12, %s1393_s25  ;;  %v198_v12 = vadd.f32 %v187_v60, %v1743_v59  ;;  %v442_v60 = vadd.f32 %v1521_v24, %v1476_v7 }
  0xbc   : > { %v275_v56 = vpop.permute.xlu0 %274 }
  0xbd   : > { %368 = vrot.lane.b32.xlu0 %v361_v37, %s1393_s25  ;;  %v199_v37 = vadd.f32 %v183_v30, %v1750_v11  ;;  %v454_v30 = vadd.f32 %v1569_v46, %v1656_v44 }
  0xbe   : > { %v319_v22 = vpop.permute.xlu1 %318 }
  0xbf   : > { %408 = vrot.lane.b32.xlu1 %v401_v43, %s1393_s25  ;;  %v281_v43 = vsel %vm278_vm5, %v275_v56, %v277_v55  ;;  %v456_v56 = vadd.f32 %v1590_v57, %v1548_v38 }
  0xc0   : > { %v317_v10 = vpop.permute.xlu0 %316 }
  0xc1   : > { %406 = vrot.lane.b32.xlu0 %v399_v47, %s1393_s25  ;;  %v322_v47 = vsel %vm278_vm5, %v317_v10, %v319_v22 }
  0xc3   : > { %412 = vrot.lane.b32.xlu1 %v400_v26, %s1393_s25  ;;  %v241_v26 = vadd.f32 %v230_v62, %v1746_v61  ;;  %v1776_v62 = vadd.f32 %v281_v43, %v198_v12  ;;  %v1791_v12 = vadd.f32 %v442_v60, %v1538_v32  ;;  %v1797_v43 = vadd.f32 %v444_v48, %v1556_v40 }
  0xc5   : > { %410 = vrot.lane.b32.xlu0 %v398_v42, %s1393_s25  ;;  %v242_v42 = vadd.f32 %v227_v49, %v1752_v13  ;;  %v453_v49 = vadd.f32 %v1576_v52, %v1531_v31 }
  0xc7   : > { %605 = vrot.lane.b32.xlu1 %v1521_v24, %s1394_s26  ;;  %v457_v24 = vadd.f32 %v1580_v54, %v1746_v61 }
  0xc9   : > { %603 = vrot.lane.b32.xlu0 %v1494_v15, %s1394_s26  ;;  %v333_v15 = vadd.f32 %v322_v47, %v241_v26  ;;  %v1794_v26 = vadd.f32 %v441_v36, %v1543_v34 }
  0xcb   : > { %609 = vrot.lane.b32.xlu1 %v1518_v23, %s1394_s26  ;;  %v445_v23 = vadd.f32 %v1470_v4, %v1743_v59  ;;  %v347_v60 = vmul.f32 3.0, %v333_v15 }
  0xcd   : > { %607 = vrot.lane.b32.xlu0 %v1491_v14, %s1394_s26  ;;  %v455_v14 = vadd.f32 %v1594_v58, %v1480_v8  ;;  %v1809_v36 = vadd.f32 %v445_v23, %v1545_v35 }
  0xcf   : > { %633 = vrot.lane.b32.xlu1 %v1569_v46, %s1394_s26  ;;  %v1784_v46 = vadd.f32 %v277_v55, %v199_v37  ;;  %v1800_v55 = vadd.f32 %v443_v39, %v1560_v41  ;;  %v477_v37 = vadd.f32 %v453_v49, %v1606_v1  ;;  %v479_v47 = vadd.f32 %v455_v14, %v1622_v9 }
  0xd0   : > { %v487_v39 = vmul.f32 %v1794_v26, %v1794_v26  ;;  %v549_v38 = vmul.f32 %v1809_v36, %v1809_v36 }
  0xd1   : > { %631 = vrot.lane.b32.xlu0 %v1576_v52, %s1394_s26  ;;  %v334_v52 = vadd.f32 %v319_v22, %v242_v42  ;;  %v478_v22 = vadd.f32 %v454_v30, %v1603_v63  ;;  %v480_v42 = vadd.f32 %v456_v56, %v1618_v5  ;;  %v490_v30 = vmul.f32 %v1797_v43, %v1797_v43 }
  0xd2   : > { %v489_v49 = vmul.f32 %v1800_v55, %v1800_v55  ;;  %v483_v14 = vmul.f32 3.0, %v477_v37  ;;  %v485_v23 = vmul.f32 3.0, %v479_v47 }
  0xd3   : > { %637 = vrot.lane.b32.xlu1 %v1590_v57, %s1394_s26  ;;  %v446_v57 = vadd.f32 %v1496_v16, %v1750_v11  ;;  %v348_v48 = vmul.f32 3.0, %v334_v52  ;;  %v484_v56 = vmul.f32 3.0, %v478_v22  ;;  %v486_v15 = vmul.f32 3.0, %v480_v42 }
  0xd4   : > { %v1842_v47 = vsub.f32 %v483_v14, %v487_v39 }
  0xd5   : > { %635 = vrot.lane.b32.xlu0 %v1594_v58, %s1394_s26  ;;  %v458_v58 = vadd.f32 %v1578_v53, %v1752_v13 }
  0xd7   : > { %660 = vrot.lane.b32.xlu1 %v1538_v32, %s1393_s25  ;;  %v349_v32 = vmul.f32 %v1776_v62, %v1776_v62 }
  0xd9   : > { %658 = vrot.lane.b32.xlu0 %v1543_v34, %s1393_s25 }
  0xdb   : > { %664 = vrot.lane.b32.xlu1 %v1556_v40, %s1393_s25  ;;  %v481_v40 = vadd.f32 %v457_v24, %v1610_v3  ;;  %v1826_v24 = vsub.f32 %v347_v60, %v349_v32  ;;  %v1844_v32 = vsub.f32 %v486_v15, %v490_v30  ;;  %v1846_v60 = vsub.f32 %v485_v23, %v489_v49 }
  0xdd   : > { %662 = vrot.lane.b32.xlu0 %v1560_v41, %s1393_s25  ;;  %v350_v41 = vmul.f32 %v1784_v46, %v1784_v46 }
  0xdf   : > { %687 = vrot.lane.b32.xlu1 %v1603_v63, %s1393_s25  ;;  %v1829_v13 = vsub.f32 %v348_v48, %v350_v41 }
  0xe1   : > { %685 = vrot.lane.b32.xlu0 %v1606_v1, %s1393_s25  ;;  %v1815_v1 = vadd.f32 %v446_v57, %v1540_v33 }
  0xe3   : > { %691 = vrot.lane.b32.xlu1 %v1618_v5, %s1393_s25  ;;  %v482_v5 = vadd.f32 %v458_v58, %v1608_v2  ;;  %v547_v58 = vmul.f32 3.0, %v481_v40  ;;  %v550_v22 = vmul.f32 %v1815_v1, %v1815_v1 }
  0xe5   : > { %689 = vrot.lane.b32.xlu0 %v1622_v9, %s1393_s25  ;;  %v488_v9 = vmul.f32 %v1791_v12, %v1791_v12  ;;  %v548_v44 = vmul.f32 3.0, %v482_v5  ;;  %v1854_v5 = vsub.f32 %v547_v58, %v549_v38 }
  0xe7   : > { %v1840_v42 = vsub.f32 %v484_v56, %v488_v9  ;;  %v1856_v9 = vsub.f32 %v548_v44, %v550_v22 }
 0x111   : > { %v1778_v10 = vpop.permute.xlu1 %404 }
 0x113   : > { %v403_v51 = vpop.permute.xlu0 %402 }
 0x114   : > { %v414_v56 = vsel %vm376_vm7, %v403_v51, %v1778_v10 }
 0x125   : > { %v367_v34 = vpop.permute.xlu1 %366 }
 0x127   : > { %v365_v63 = vpop.permute.xlu0 %364 }
 0x128   : > { %v377_v52 = vsel %vm376_vm7, %v365_v63, %v367_v34  ;;  %vm386_vm8 = vcmp.lt.f32.partialorder %v1680_v45, %v365_v63 }
 0x129   : > { %v375_v57 = vpop.permute.xlu1 %374  ;;  %vm387_vm10 = vcmp.lt.f32.partialorder %v1677_v50, %v377_v52  ;;  %v429_v40 = vsel %vm386_vm8, %v1680_v45, %v365_v63  ;;  %v423_v38 = vsel %vm386_vm8, %v1650_v29, %v403_v51 }
 0x12a   : > { %v430_v39 = vsel %vm387_vm10, %v1677_v50, %v377_v52  ;;  %v501_v14 = vrot.slane %v429_v40, 2  ;;  %v424_v10 = vsel %vm387_vm10, %v1647_v27, %v414_v56 }
 0x12b   : > { %v373_v61 = vpop.permute.xlu0 %372  ;;  %v504_v45 = vrot.slane %v430_v39, 2 }
 0x12c   : > { %v379_v37 = vsel %vm376_vm7, %v373_v61, %v375_v57  ;;  %vm390_vm9 = vcmp.lt.f32.partialorder %v1826_v24, %v373_v61 }
 0x12d   : > { %vm391_vm11 = vcmp.lt.f32.partialorder %v1829_v13, %v379_v37  ;;  %v371_v34 = vpop.permute.xlu1 %370  ;;  %v433_v41 = vsel %vm390_vm9, %v1826_v24, %v373_v61 }
 0x12e   : > { %v434_v30 = vsel %vm391_vm11, %v1829_v13, %v379_v37  ;;  %v507_v15 = vrot.slane %v433_v41, 2 }
 0x12f   : > { %v369_v48 = vpop.permute.xlu0 %368  ;;  %v509_v51 = vrot.slane %v434_v30, 2 }
 0x130   : > { %v378_v49 = vsel %vm376_vm7, %v369_v48, %v371_v34  ;;  %vm388_vm12 = vcmp.lt.f32.partialorder %v1691_v21, %v369_v48 }
 0x131   : > { %vm389_vm13 = vcmp.lt.f32.partialorder %v1688_v17, %v378_v49  ;;  %v431_v44 = vsel %vm388_vm12, %v1691_v21, %v369_v48  ;;  %v409_v58 = vpop.permute.xlu1 %408  ;;  %v528_v48 = vrot.slane %v424_v10, 2 }
 0x132   : > { %v432_v23 = vsel %vm389_vm13, %v1688_v17, %v378_v49  ;;  %v502_v57 = vrot.slane %v431_v44, 2  ;;  %v525_v44 = vrot.slane %v423_v38, 2 }
 0x133   : > { %v505_v29 = vrot.slane %v432_v23, 2  ;;  %v407_v63 = vpop.permute.xlu0 %406 }
 0x134   : > { %v503_v22 = vsel %vm255_vm2, %v501_v14, %v502_v57  ;;  %v508_v34 = vsel %vm255_vm2, %v502_v57, %v507_v15  ;;  %v415_v40 = vsel %vm376_vm7, %v407_v63, %v409_v58  ;;  %v425_v41 = vsel %vm388_vm12, %v1672_v28, %v407_v63 }
 0x135   : > { %v1888_v7 = vsel %vm255_vm2, %v504_v45, %v505_v29  ;;  %vm515_vm14 = vcmp.lt.f32.partialorder %v1842_v47, %v503_v22  ;;  %vm517_vm15 = vcmp.lt.f32.partialorder %v1846_v60, %v508_v34  ;;  %v510_v27 = vsel %vm255_vm2, %v505_v29, %v509_v51  ;;  %v413_v28 = vpop.permute.xlu1 %412 }
 0x136   : > { %v545_v50 = vsel %vm517_vm15, %v1846_v60, %v508_v34  ;;  %v426_v52 = vsel %vm389_vm13, %v1667_v25, %v415_v40  ;;  %v526_v21 = vrot.slane %v425_v41, 2  ;;  %v543_v56 = vsel %vm515_vm14, %v1842_v47, %v503_v22 }
 0x137   : > { %v559_v39 = vrot.slane %v545_v50, 6  ;;  %v411_v30 = vpop.permute.xlu0 %410  ;;  %vm516_vm0 = vcmp.lt.f32.partialorder %v1840_v42, %v1888_v7  ;;  %v557_v17 = vrot.slane %v543_v56, 6  ;;  %vm518_vm1 = vcmp.lt.f32.partialorder %v1844_v32, %v510_v27 }
 0x138   : > { %v527_v38 = vsel %vm255_vm2, %v525_v44, %v526_v21  ;;  %v416_v14 = vsel %vm376_vm7, %v411_v30, %v413_v28  ;;  %v427_v25 = vsel %vm390_vm9, %v1776_v62, %v411_v30  ;;  %v529_v49 = vrot.slane %v426_v52, 2 }
 0x139   : > { %v428_v15 = vsel %vm391_vm11, %v1784_v46, %v416_v14  ;;  %v531_v23 = vrot.slane %v427_v25, 2  ;;  %v539_v57 = vsel %vm515_vm14, %v1794_v26, %v527_v38  ;;  %v560_v10 = vsel %vm357_vm6, %v557_v17, %v559_v39 }
 0x13a   : > { %v533_v58 = vrot.slane %v428_v15, 2  ;;  %vm569_vm3 = vcmp.lt.f32.partialorder %v1842_v47, %v557_v17  ;;  %vm571_vm8 = vcmp.lt.f32.partialorder %v1846_v60, %v560_v10  ;;  %v544_v13 = vsel %vm516_vm0, %v1840_v42, %v1888_v7 }
 0x13b   : > { %v532_v61 = vsel %vm255_vm2, %v526_v21, %v531_v23  ;;  %v597_v62 = vsel %vm569_vm3, %v1842_v47, %v557_v17  ;;  %v599_v37 = vsel %vm571_vm8, %v1846_v60, %v560_v10  ;;  %v579_v51 = vrot.slane %v539_v57, 6 }
 0x13c   : > { %v534_v46 = vsel %vm255_vm2, %v529_v49, %v533_v58  ;;  %v541_v24 = vsel %vm517_vm15, %v1800_v55, %v532_v61  ;;  %v730_v45 = vrot.slane %v597_v62, 2  ;;  %v731_v63 = vrot.slane %v599_v37, 2 }
 0x13d   : > { %v581_v29 = vrot.slane %v541_v24, 6  ;;  %v546_v22 = vsel %vm518_vm1, %v1844_v32, %v510_v27  ;;  %v542_v40 = vsel %vm518_vm1, %v1797_v43, %v534_v46  ;;  %v558_v41 = vrot.slane %v544_v13, 6 }
 0x13e   : > { %v561_v44 = vrot.slane %v546_v22, 6  ;;  %vm573_vm9 = vcmp.lt.f32.partialorder %v1854_v5, %v559_v39  ;;  %v530_v34 = vsel %vm255_vm2, %v528_v48, %v529_v49  ;;  %v732_v50 = vsel %vm255_vm2, %v730_v45, %v731_v63 }
 0x13f   : > { %v601_v52 = vsel %vm573_vm9, %v1854_v5, %v559_v39  ;;  %v582_v21 = vsel %vm357_vm6, %v579_v51, %v581_v29  ;;  %740 = vrot.lane.b32.xlu0 %v732_v50, %s1393_s25  ;;  %vm570_vm10 = vcmp.lt.f32.partialorder %v1840_v42, %v558_v41  ;;  %v583_v30 = vrot.slane %v542_v40, 6 }
 0x140   : > { %v562_v28 = vsel %vm357_vm6, %v558_v41, %v561_v44  ;;  %v736_v27 = vrot.slane %v601_v52, 2  ;;  %vm574_vm11 = vcmp.lt.f32.partialorder %v1856_v9, %v561_v44  ;;  %v598_v48 = vsel %vm570_vm10, %v1840_v42, %v558_v41  ;;  %v2427_v52 = vld [vmem:[#allocation6_spill] sm:$0xff] }
 0x141   : > { %vm572_vm12 = vcmp.lt.f32.partialorder %v1844_v32, %v562_v28  ;;  %v593_v56 = vsel %vm571_vm8, %v1800_v55, %v582_v21  ;;  %v733_v14 = vrot.slane %v598_v48, 2  ;;  %v602_v25 = vsel %vm574_vm11, %v1856_v9, %v561_v44 }
 0x142   : > { %v600_v38 = vsel %vm572_vm12, %v1844_v32, %v562_v28  ;;  %v591_v49 = vsel %vm569_vm3, %v1794_v26, %v579_v51  ;;  %v737_v23 = vsel %vm255_vm2, %v731_v63, %v736_v27  ;;  %v765_v57 = vrot.slane %v593_v56, 2  ;;  %v2428_v28 = vld [vmem:[#allocation10_spill] sm:$0xff] }
 0x143   : > { %v734_v15 = vrot.slane %v600_v38, 2  ;;  %v540_v55 = vsel %vm516_vm0, %v1791_v12, %v530_v34  ;;  %744 = vrot.lane.b32.xlu0 %v737_v23, %s1393_s25  ;;  %v595_v58 = vsel %vm573_vm9, %v1809_v36, %v581_v29  ;;  %v738_v47 = vrot.slane %v602_v25, 2  ;;  %v2429_v23 = vld [vmem:[#allocation7_spill] sm:$0xff] }
 0x144   : > { %v580_v60 = vrot.slane %v540_v55, 6  ;;  %v764_v26 = vrot.slane %v591_v49, 2  ;;  %v770_v62 = vrot.slane %v595_v58, 2  ;;  %v596_v13 = vsel %vm574_vm11, %v1815_v1, %v583_v30 }
 0x145   : > { %v735_v10 = vsel %vm255_vm2, %v733_v14, %v734_v15  ;;  %v739_v5 = vsel %vm255_vm2, %v734_v15, %v738_v47  ;;  %v772_v24 = vrot.slane %v596_v13, 2 }
 0x146   : > { %742 = vrot.lane.b32.xlu1 %v735_v10, %s1393_s25  ;;  %v584_v17 = vsel %vm357_vm6, %v580_v60, %v583_v30  ;;  %v766_v61 = vsel %vm255_vm2, %v764_v26, %v765_v57  ;;  %v592_v36 = vsel %vm570_vm10, %v1791_v12, %v580_v60  ;;  %v771_v32 = vsel %vm255_vm2, %v765_v57, %v770_v62 }
 0x147   : > { %v594_v7 = vsel %vm572_vm12, %v1797_v43, %v584_v17  ;;  %774 = vrot.lane.b32.xlu0 %v766_v61, %s1393_s25  ;;  %v767_v46 = vrot.slane %v592_v36, 2 }
 0x148   : > { %v768_v39 = vrot.slane %v594_v7, 2 }
 0x14a   : > { %746 = vrot.lane.b32.xlu1 %v739_v5, %s1393_s25  ;;  %v769_v43 = vsel %vm255_vm2, %v767_v46, %v768_v39  ;;  %v773_v12 = vsel %vm255_vm2, %v768_v39, %v772_v24  ;;  %vm615_vm2 = vcmask 7168  }
 0x14b   : > { %778 = vrot.lane.b32.xlu0 %v771_v32, %s1393_s25 }
 0x14e   : > { %776 = vrot.lane.b32.xlu1 %v769_v43, %s1393_s25 }
 0x14f   : > { %611 = vrot.lane.b32.xlu0 %v1470_v4, %s1394_s26  ;;  %v604_v4 = vpop.permute.xlu0 %603 }
 0x150   : > { %v625_v37 = vadd.f32 %v604_v4, %v1510_v20 }
 0x152   : > { %780 = vrot.lane.b32.xlu1 %v773_v12, %s1393_s25 }
 0x153   : > { %639 = vrot.lane.b32.xlu0 %v1580_v54, %s1394_s26 }
 0x156   : > { %613 = vrot.lane.b32.xlu1 %v1496_v16, %s1394_s26  ;;  %v606_v16 = vpop.permute.xlu1 %605 }
 0x157   : > { %666 = vrot.lane.b32.xlu0 %v1545_v35, %s1393_s25  ;;  %v616_v29 = vsel %vm615_vm2, %v604_v4, %v606_v16 }
 0x158   : > { %v626_v21 = vadd.f32 %v616_v29, %v2427_v52 }
 0x15a   : > { %641 = vrot.lane.b32.xlu1 %v1578_v53, %s1394_s26  ;;  %v610_v35 = vpop.permute.xlu1 %609 }
 0x15b   : > { %693 = vrot.lane.b32.xlu0 %v1610_v3, %s1393_s25 }
 0x15e   : > { %668 = vrot.lane.b32.xlu1 %v1540_v33, %s1393_s25  ;;  %v608_v33 = vpop.permute.xlu0 %607  ;;  %v634_v54 = vpop.permute.xlu1 %633 }
 0x15f   : > { %884 = vrot.lane.b32.xlu0 %v1502_v19, %s1391_s23  ;;  %v627_v40 = vadd.f32 %v608_v33, %v1465_v0  ;;  %v617_v20 = vsel %vm615_vm2, %v608_v33, %v610_v35 }
 0x160   : > { %v628_v15 = vadd.f32 %v617_v20, %v1473_v6 }
 0x162   : > { %695 = vrot.lane.b32.xlu1 %v1608_v2, %s1393_s25  ;;  %v632_v53 = vpop.permute.xlu0 %631  ;;  %v638_v3 = vpop.permute.xlu1 %637 }
 0x163   : > { %888 = vrot.lane.b32.xlu0 %v1465_v0, %s1391_s23  ;;  %v652_v51 = vadd.f32 %v632_v53, %v1531_v31  ;;  %v643_v41 = vsel %vm615_vm2, %v632_v53, %v634_v54 }
 0x164   : > { %v653_v27 = vadd.f32 %v643_v41, %v2428_v28 }
 0x166   : > { %886 = vrot.lane.b32.xlu1 %v1499_v18, %s1391_s23  ;;  %v636_v2 = vpop.permute.xlu0 %635  ;;  %v661_v42 = vpop.permute.xlu1 %660 }
 0x167   : > { %892 = vrot.lane.b32.xlu0 %v1743_v59, %s1391_s23  ;;  %v654_v44 = vadd.f32 %v636_v2, %v1480_v8  ;;  %v644_v31 = vsel %vm615_vm2, %v636_v2, %v638_v3 }
 0x168   : > { %v655_v57 = vadd.f32 %v644_v31, %v2429_v23 }
 0x16a   : > { %890 = vrot.lane.b32.xlu1 %v1473_v6, %s1391_s23  ;;  %v659_v1 = vpop.permute.xlu0 %658  ;;  %v665_v9 = vpop.permute.xlu1 %664 }
 0x16b   : > { %v2030_v63 = vadd.f32 %v659_v1, %v625_v37  ;;  %v670_v30 = vsel %vm376_vm7, %v659_v1, %v661_v42 }
 0x16c   : > { %v2045_v49 = vadd.f32 %v670_v30, %v626_v21 }
 0x16d   : > { %v716_v48 = vmul.f32 %v2030_v63, %v2030_v63 }
 0x16e   : > { %894 = vrot.lane.b32.xlu1 %v1750_v11, %s1391_s23  ;;  %v663_v18 = vpop.permute.xlu0 %662  ;;  %v688_v22 = vpop.permute.xlu1 %687  ;;  %v717_v61 = vmul.f32 %v2045_v49, %v2045_v49 }
 0x16f   : > { %v2042_v0 = vadd.f32 %v663_v18, %v627_v40  ;;  %v671_v55 = vsel %vm376_vm7, %v663_v18, %v665_v9 }
 0x170   : > { %v2058_v6 = vadd.f32 %v671_v55, %v628_v15  ;;  %v2431_v55 = vld [vmem:[#allocation8_spill] sm:$0xff] }
 0x171   : > { %v718_v10 = vmul.f32 %v2042_v0, %v2042_v0 }
 0x172   : > { %v686_v45 = vpop.permute.xlu0 %685  ;;  %v692_v25 = vpop.permute.xlu1 %691  ;;  %v719_v32 = vmul.f32 %v2058_v6, %v2058_v6 }
 0x173   : > { %v706_v34 = vadd.f32 %v686_v45, %v652_v51  ;;  %v697_v56 = vsel %vm376_vm7, %v686_v45, %v688_v22 }
 0x174   : > { %v707_v60 = vadd.f32 %v697_v56, %v653_v27 }
 0x175   : > { %v712_v38 = vmul.f32 3.0, %v706_v34 }
 0x176   : > { %v690_v50 = vpop.permute.xlu0 %689  ;;  %v713_v7 = vmul.f32 3.0, %v707_v60 }
 0x177   : > { %v708_v14 = vadd.f32 %v690_v50, %v654_v44  ;;  %v2050_v58 = vsub.f32 %v712_v38, %v716_v48  ;;  %v698_v47 = vsel %vm376_vm7, %v690_v50, %v692_v25  ;;  %v2430_v38 = vld [vmem:[#allocation9_spill] sm:$0xff] }
 0x178   : > { %v709_v62 = vadd.f32 %v698_v47, %v655_v57  ;;  %v2067_v46 = vsub.f32 %v713_v7, %v717_v61  ;;  %v2433_v7 = vld [vmem:[#allocation12_spill] sm:$0xff] }
 0x179   : > { %v714_v26 = vmul.f32 3.0, %v708_v14 }
 0x17a   : > { %v715_v43 = vmul.f32 3.0, %v709_v62  ;;  %v2142_v62 = vld [vmem:[%s1462_s22 + $0x10] sm:$0xff] }
 0x17b   : > { %v2063_v5 = vsub.f32 %v714_v26, %v718_v10  ;;  %v2432_v10 = vld [vmem:[#allocation11_spill] sm:$0xff] }
 0x17c   : > { %v2083_v54 = vsub.f32 %v715_v43, %v719_v32 }
 0x1b1   : > { %v741_v17 = vpop.permute.xlu0 %740 }
 0x1b2   : > { %vm754_vm13 = vcmp.lt.f32.partialorder %v2050_v58, %v741_v17 }
 0x1b3   : > { %v792_v36 = vsel %vm754_vm13, %v2050_v58, %v741_v17 }
 0x1b4   : > { %v806_v39 = vrot.slane %v792_v36, 6  ;;  %v2147_v36 = vld [vmem:[%s1462_s22 + $0x8] sm:$0xfc] }
 0x1b5   : > { %v745_v13 = vpop.permute.xlu0 %744 }
 0x1b6   : > { %vm756_vm14 = vcmp.lt.f32.partialorder %v2063_v5, %v745_v13  ;;  %812 = vrot.lane.b32.xlu0 %v806_v39, %s1392_s24 }
 0x1b7   : > { %v794_v12 = vsel %vm756_vm14, %v2063_v5, %v745_v13 }
 0x1b8   : > { %v743_v24 = vpop.permute.xlu1 %742  ;;  %v808_v16 = vrot.slane %v794_v12, 6 }
 0x1b9   : > { %v748_v4 = vsel %vm376_vm7, %v741_v17, %v743_v24  ;;  %v775_v33 = vpop.permute.xlu0 %774 }
 0x1ba   : > { %vm755_vm15 = vcmp.lt.f32.partialorder %v2067_v46, %v748_v4  ;;  %v788_v53 = vsel %vm754_vm13, %v2030_v63, %v775_v33  ;;  %820 = vrot.lane.b32.xlu0 %v808_v16, %s1392_s24  ;;  %v809_v21 = vsel %vm357_vm6, %v806_v39, %v808_v16  ;;  %v2162_v39 = vld [vmem:[#allocation2 + $0x10] sm:$0xff] }
 0x1bb   : > { %v793_v35 = vsel %vm755_vm15, %v2067_v46, %v748_v4  ;;  %v843_v1 = vrot.slane %v788_v53, 6 }
 0x1bc   : > { %v747_v2 = vpop.permute.xlu1 %746  ;;  %v807_v3 = vrot.slane %v793_v35, 6 }
 0x1bd   : > { %v749_v42 = vsel %vm376_vm7, %v745_v13, %v747_v2  ;;  %v779_v18 = vpop.permute.xlu0 %778 }
 0x1be   : > { %vm757_vm0 = vcmp.lt.f32.partialorder %v2083_v54, %v749_v42  ;;  %814 = vrot.lane.b32.xlu1 %v807_v3, %s1392_s24  ;;  %v790_v37 = vsel %vm756_vm14, %v2042_v0, %v779_v18  ;;  %849 = vrot.lane.b32.xlu0 %v843_v1, %s1392_s24 }
 0x1bf   : > { %v795_v9 = vsel %vm757_vm0, %v2083_v54, %v749_v42  ;;  %v845_v29 = vrot.slane %v790_v37, 6 }
 0x1c0   : > { %v777_v45 = vpop.permute.xlu1 %776  ;;  %v810_v51 = vrot.slane %v795_v9, 6 }
 0x1c1   : > { %v782_v22 = vsel %vm376_vm7, %v775_v33, %v777_v45  ;;  %v612_v41 = vpop.permute.xlu0 %611  ;;  %v846_v31 = vsel %vm357_vm6, %v843_v1, %v845_v29 }
 0x1c2   : > { %v789_v40 = vsel %vm755_vm15, %v2045_v49, %v782_v22  ;;  %822 = vrot.lane.b32.xlu1 %v810_v51, %s1392_s24  ;;  %857 = vrot.lane.b32.xlu0 %v845_v29, %s1392_s24  ;;  %v811_v56 = vsel %vm357_vm6, %v807_v3, %v810_v51  ;;  %v629_v4 = vadd.f32 %v612_v41, %v1743_v59 }
 0x1c3   : > { %v844_v44 = vrot.slane %v789_v40, 6 }
 0x1c4   : > { %v781_v34 = vpop.permute.xlu1 %780 }
 0x1c5   : > { %v783_v50 = vsel %vm376_vm7, %v779_v18, %v781_v34  ;;  %v640_v20 = vpop.permute.xlu0 %639 }
 0x1c6   : > { %v791_v52 = vsel %vm757_vm0, %v2058_v6, %v783_v50  ;;  %851 = vrot.lane.b32.xlu1 %v844_v44, %s1392_s24  ;;  %816 = vrot.lane.b32.xlu0 %v809_v21, %s1392_s24  ;;  %v656_v16 = vadd.f32 %v640_v20, %v2432_v10 }
 0x1c7   : > { %v847_v28 = vrot.slane %v791_v52, 6 }
 0x1c8   : > { %v614_v27 = vpop.permute.xlu1 %613 }
 0x1c9   : > { %v667_v48 = vpop.permute.xlu0 %666  ;;  %v848_v25 = vsel %vm357_vm6, %v844_v44, %v847_v28  ;;  %v618_v32 = vsel %vm615_vm2, %v612_v41, %v614_v27 }
 0x1ca   : > { %859 = vrot.lane.b32.xlu1 %v847_v28, %s1392_s24  ;;  %853 = vrot.lane.b32.xlu0 %v846_v31, %s1392_s24  ;;  %v630_v24 = vadd.f32 %v618_v32, %v1750_v11  ;;  %v683_v1 = vadd.f32 %v667_v48, %v629_v4 }
 0x1cc   : > { %v642_v30 = vpop.permute.xlu1 %641  ;;  %v798_v45 = vmul.f32 %v683_v1, %v683_v1 }
 0x1cd   : > { %v694_v15 = vpop.permute.xlu0 %693  ;;  %v645_v43 = vsel %vm615_vm2, %v640_v20, %v642_v30 }
 0x1ce   : > { %818 = vrot.lane.b32.xlu1 %v811_v56, %s1392_s24  ;;  %913 = vrot.lane.b32.xlu0 %v2430_v38, %s1391_s23  ;;  %v657_v12 = vadd.f32 %v645_v43, %v2433_v7  ;;  %v710_v42 = vadd.f32 %v694_v15, %v656_v16 }
 0x1d0   : > { %v669_v14 = vpop.permute.xlu1 %668  ;;  %v796_v51 = vmul.f32 3.0, %v710_v42 }
 0x1d1   : > { %v885_v60 = vpop.permute.xlu0 %884  ;;  %v672_v33 = vsel %vm376_vm7, %v667_v48, %v669_v14 }
 0x1d2   : > { %855 = vrot.lane.b32.xlu1 %v848_v25, %s1392_s24  ;;  %917 = vrot.lane.b32.xlu0 %v1480_v8, %s1391_s23  ;;  %v684_v2 = vadd.f32 %v672_v33, %v630_v24  ;;  %v800_v50 = vsub.f32 %v796_v51, %v798_v45  ;;  %v1324_v51 = vld [vmem:[#allocation2] sm:$0xfc] }
 0x1d4   : > { %v696_v57 = vpop.permute.xlu1 %695  ;;  %v799_v9 = vmul.f32 %v684_v2, %v684_v2 }
 0x1d5   : > { %v889_v8 = vpop.permute.xlu0 %888 }
 0x1d6   : > { %915 = vrot.lane.b32.xlu1 %v2431_v55, %s1391_s23  ;;  %921 = vrot.lane.b32.xlu0 %v2432_v10, %s1391_s23 }
 0x1d8   : > { %v2123_v47 = vpop.permute.xlu1 %886 }
 0x1d9   : > { %v2127_v26 = vsel %vm184_vm4, %v885_v60, %v2123_v47  ;;  %v2174_v13 = vpop.permute.xlu0 %892 }
 0x1da   : > { %919 = vrot.lane.b32.xlu1 %v2429_v23, %s1391_s23  ;;  %940 = vrot.lane.b32.xlu0 %v1502_v19, %s1392_s24  ;;  %v2154_v19 = vld [vmem:[%s1462_s22 + $0x18] sm:$0xff] }
 0x1dc   : > { %v2133_v17 = vpop.permute.xlu1 %890 }
 0x1dd   : > { %v2137_v61 = vsel %vm184_vm4, %v889_v8, %v2133_v17 }
 0x1de   : > { %923 = vrot.lane.b32.xlu1 %v2433_v7, %s1391_s23  ;;  %944 = vrot.lane.b32.xlu0 %v2142_v62, %s1392_s24 }
 0x1e0   : > { %v2184_v53 = vpop.permute.xlu1 %894 }
 0x1e2   : > { %942 = vrot.lane.b32.xlu1 %v2147_v36, %s1392_s24  ;;  %948 = vrot.lane.b32.xlu0 %v1743_v59, %s1392_s24 }
 0x1e6   : > { %946 = vrot.lane.b32.xlu1 %v2154_v19, %s1392_s24  ;;  %967 = vrot.lane.b32.xlu0 %v2430_v38, %s1392_s24 }
 0x1ea   : > { %950 = vrot.lane.b32.xlu1 %v1750_v11, %s1392_s24  ;;  %971 = vrot.lane.b32.xlu0 %v2162_v39, %s1392_s24 }
 0x1ee   : > { %969 = vrot.lane.b32.xlu1 %v2431_v55, %s1392_s24  ;;  %975 = vrot.lane.b32.xlu0 %v2432_v10, %s1392_s24 }
 0x1f2   : > { %973 = vrot.lane.b32.xlu1 %v2429_v23, %s1392_s24  ;;  %v699_v23 = vsel %vm376_vm7, %v694_v15, %v696_v57 }
 0x1f3   : > { %v711_v3 = vadd.f32 %v699_v23, %v657_v12 }
 0x1f5   : > { %v797_v37 = vmul.f32 3.0, %v711_v3 }
 0x1f6   : > { %977 = vrot.lane.b32.xlu1 %v2433_v7, %s1392_s24 }
 0x1f7   : > { %v801_v44 = vsub.f32 %v797_v37, %v799_v9  ;;  %v1323_v37 = vld [vmem:[#allocation2 + $0x8] sm:$0xfc] }
 0x228   : > { %v813_v35 = vpop.permute.xlu0 %812 }
 0x22c   : > { %v821_v18 = vpop.permute.xlu0 %820 }
 0x230   : > { %v815_v29 = vpop.permute.xlu1 %814  ;;  %v850_v41 = vpop.permute.xlu0 %849 }
 0x231   : > { %v824_v22 = vsel %vm278_vm5, %v813_v35, %v815_v29  ;;  %vm834_vm6 = vcmp.lt.f32.partialorder %v2067_v46, %v815_v29 }
 0x232   : > { %vm833_vm1 = vcmp.lt.f32.partialorder %v2050_v58, %v824_v22  ;;  %v877_v40 = vsel %vm834_vm6, %v2067_v46, %v815_v29 }
 0x233   : > { %1020 = vrot.lane.b32.xlu1 %v877_v40, %s1392_s24  ;;  %v876_v34 = vsel %vm833_vm1, %v2050_v58, %v824_v22 }
 0x234   : > { %v823_v52 = vpop.permute.xlu1 %822  ;;  %1018 = vrot.lane.b32.xlu0 %v876_v34, %s1392_s24  ;;  %v858_v31 = vpop.permute.xlu0 %857 }
 0x235   : > { %v826_v21 = vsel %vm278_vm5, %v821_v18, %v823_v52  ;;  %vm838_vm3 = vcmp.lt.f32.partialorder %v801_v44, %v823_v52 }
 0x236   : > { %vm837_vm8 = vcmp.lt.f32.partialorder %v800_v50, %v826_v21  ;;  %v881_v20 = vsel %vm838_vm3, %v801_v44, %v823_v52 }
 0x237   : > { %1028 = vrot.lane.b32.xlu1 %v881_v20, %s1392_s24  ;;  %v880_v28 = vsel %vm837_vm8, %v800_v50, %v826_v21  ;;  %v1325_v21 = vld [vmem:[%s1462_s22] sm:$0xfc] }
 0x238   : > { %v852_v27 = vpop.permute.xlu1 %851  ;;  %1026 = vrot.lane.b32.xlu0 %v880_v28, %s1392_s24  ;;  %v817_v14 = vpop.permute.xlu0 %816  ;;  %v905_v20 = vadd.f32 %v1325_v21, %v2127_v26 }
 0x239   : > { %v861_v30 = vsel %vm278_vm5, %v850_v41, %v852_v27  ;;  %v871_v48 = vsel %vm834_vm6, %v2045_v49, %v852_v27  ;;  %v906_v41 = vadd.f32 %v2147_v36, %v2123_v47  ;;  %v898_v27 = vsel %vm184_vm4, %v2174_v13, %v2184_v53 }
 0x23a   : > { %v870_v56 = vsel %vm833_vm1, %v2030_v63, %v861_v30 }
 0x23b   : > { %1053 = vrot.lane.b32.xlu1 %v871_v48, %s1392_s24 }
 0x23c   : > { %v860_v38 = vpop.permute.xlu1 %859  ;;  %1051 = vrot.lane.b32.xlu0 %v870_v56, %s1392_s24  ;;  %v854_v63 = vpop.permute.xlu0 %853 }
 0x23d   : > { %v863_v8 = vsel %vm278_vm5, %v858_v31, %v860_v38 }
 0x240   : > { %v819_v25 = vpop.permute.xlu1 %818  ;;  %v914_v43 = vpop.permute.xlu0 %913 }
 0x241   : > { %v825_v15 = vsel %vm278_vm5, %v817_v14, %v819_v25  ;;  %vm836_vm9 = vcmp.lt.f32.partialorder %v2083_v54, %v819_v25 }
 0x242   : > { %vm835_vm10 = vcmp.lt.f32.partialorder %v2063_v5, %v825_v15  ;;  %v879_v46 = vsel %vm836_vm9, %v2083_v54, %v819_v25  ;;  %v875_v54 = vsel %vm838_vm3, %v684_v2, %v860_v38  ;;  %v909_v38 = vadd.f32 %v898_v27, %v1743_v59 }
 0x243   : > { %1024 = vrot.lane.b32.xlu1 %v879_v46, %s1392_s24  ;;  %v878_v49 = vsel %vm835_vm10, %v2063_v5, %v825_v15  ;;  %v874_v5 = vsel %vm837_vm8, %v683_v1, %v863_v8  ;;  %vm1174_vm8 = vcmask 1014784  }
 0x244   : > { %v856_v58 = vpop.permute.xlu1 %855  ;;  %1022 = vrot.lane.b32.xlu0 %v878_v49, %s1392_s24 }
 0x245   : > { %v862_v57 = vsel %vm278_vm5, %v854_v63, %v856_v58  ;;  %v873_v55 = vsel %vm836_vm9, %v2058_v6, %v856_v58  ;;  %v918_v6 = vpop.permute.xlu0 %917 }
 0x246   : > { %v872_v60 = vsel %vm835_vm10, %v2042_v0, %v862_v57 }
 0x247   : > { %1057 = vrot.lane.b32.xlu1 %v873_v55, %s1392_s24 }
 0x248   : > { %1055 = vrot.lane.b32.xlu0 %v872_v60, %s1392_s24  ;;  %v916_v32 = vpop.permute.xlu1 %915 }
 0x249   : > { %v922_v0 = vpop.permute.xlu0 %921  ;;  %v925_v9 = vsel %vm184_vm4, %v914_v43, %v916_v32  ;;  %v935_v45 = vadd.f32 %v1323_v37, %v916_v32 }
 0x24a   : > { %v934_v29 = vadd.f32 %v1324_v51, %v925_v9 }
 0x24b   : > { %1061 = vrot.lane.b32.xlu1 %v875_v54, %s1392_s24 }
 0x24c   : > { %1059 = vrot.lane.b32.xlu0 %v874_v5, %s1392_s24  ;;  %v920_v24 = vpop.permute.xlu1 %919  ;;  %v1326_v5 = vld [vmem:[#allocation2 + $0x18] sm:$0xff] }
 0x24d   : > { %v941_v16 = vpop.permute.xlu0 %940  ;;  %v926_v60 = vsel %vm184_vm4, %v918_v6, %v920_v24  ;;  %v937_v32 = vadd.f32 %v1326_v5, %v920_v24 }
 0x250   : > { %v924_v12 = vpop.permute.xlu1 %923 }
 0x251   : > { %v2230_v23 = vpop.permute.xlu0 %944  ;;  %v927_v22 = vsel %vm184_vm4, %v922_v0, %v924_v12  ;;  %v939_v44 = vadd.f32 %v924_v12, %v2433_v7  ;;  %v910_v7 = vadd.f32 %v2184_v53, %v1750_v11 }
 0x252   : > { %v938_v31 = vadd.f32 %v927_v22, %v2432_v10 }
 0x254   : > { %v943_v4 = vpop.permute.xlu1 %942 }
 0x255   : > { %v949_v2 = vpop.permute.xlu0 %948  ;;  %v952_v28 = vsel %vm278_vm5, %v941_v16, %v943_v4  ;;  %v2245_v30 = vadd.f32 %v943_v4, %v906_v41  ;;  %v936_v4 = vadd.f32 %v2162_v39, %v926_v60 }
 0x256   : > { %v2250_v36 = vadd.f32 %v952_v28, %v905_v20 }
 0x257   : > { %v1001_v10 = vmul.f32 %v2245_v30, %v2245_v30 }
 0x258   : > { %v2228_v33 = vpop.permute.xlu1 %946  ;;  %v1000_v11 = vmul.f32 %v2250_v36, %v2250_v36 }
 0x259   : > { %v968_v42 = vpop.permute.xlu0 %967  ;;  %v953_v39 = vsel %vm278_vm5, %v2230_v23, %v2228_v33 }
 0x25c   : > { %v951_v35 = vpop.permute.xlu1 %950 }
 0x25d   : > { %v972_v18 = vpop.permute.xlu0 %971  ;;  %v954_v14 = vsel %vm278_vm5, %v949_v2, %v951_v35  ;;  %v2254_v25 = vadd.f32 %v951_v35, %v910_v7 }
 0x25e   : > { %v2258_v46 = vadd.f32 %v954_v14, %v909_v38 }
 0x25f   : > { %v1005_v59 = vmul.f32 %v2254_v25, %v2254_v25 }
 0x260   : > { %v970_v3 = vpop.permute.xlu1 %969  ;;  %v1004_v12 = vmul.f32 %v2258_v46, %v2258_v46 }
 0x261   : > { %v979_v40 = vsel %vm278_vm5, %v968_v42, %v970_v3  ;;  %v989_v34 = vadd.f32 %v970_v3, %v935_v45  ;;  %v976_v52 = vpop.permute.xlu0 %975  ;;  %v908_v42 = vadd.f32 %v2154_v19, %v2133_v17  ;;  %v907_v45 = vadd.f32 %v2142_v62, %v2137_v61 }
 0x262   : > { %v988_v48 = vadd.f32 %v979_v40, %v934_v29 }
 0x263   : > { %v995_v56 = vmul.f32 3.0, %v989_v34  ;;  %v2306_v51 = vadd.f32 %v2228_v33, %v908_v42  ;;  %v963_v29 = vadd.f32 %v953_v39, %v907_v45 }
 0x264   : > { %v974_v1 = vpop.permute.xlu1 %973  ;;  %v994_v13 = vmul.f32 3.0, %v988_v48 }
 0x265   : > { %v2260_v49 = vsub.f32 %v995_v56, %v1001_v10  ;;  %v980_v35 = vsel %vm278_vm5, %v972_v18, %v974_v1  ;;  %v991_v9 = vadd.f32 %v974_v1, %v937_v32  ;;  %v1003_v62 = vmul.f32 %v2306_v51, %v2306_v51 }
 0x266   : > { %v2264_v58 = vsub.f32 %v994_v13, %v1000_v11  ;;  %v990_v17 = vadd.f32 %v980_v35, %v936_v4  ;;  %v1002_v41 = vmul.f32 %v963_v29, %v963_v29 }
 0x267   : > { %v997_v22 = vmul.f32 3.0, %v991_v9 }
 0x268   : > { %v978_v50 = vpop.permute.xlu1 %977  ;;  %v996_v33 = vmul.f32 3.0, %v990_v17 }
 0x269   : > { %v981_v47 = vsel %vm278_vm5, %v976_v52, %v978_v50  ;;  %v993_v26 = vadd.f32 %v978_v50, %v939_v44  ;;  %v1009_v40 = vsub.f32 %v997_v22, %v1003_v62 }
 0x26a   : > { %v992_v15 = vadd.f32 %v981_v47, %v938_v31  ;;  %v1008_v34 = vsub.f32 %v996_v33, %v1002_v41 }
 0x26b   : > { %v999_v53 = vmul.f32 3.0, %v993_v26 }
 0x26c   : > { %v998_v57 = vmul.f32 3.0, %v992_v15 }
 0x26d   : > { %v2274_v43 = vsub.f32 %v999_v53, %v1005_v59 }
 0x26e   : > { %v2284_v16 = vsub.f32 %v998_v57, %v1004_v12 }
 0x2a5   : > { %v1021_v63 = vpop.permute.xlu1 %1020 }
 0x2a6   : > { %vm1040_vm11 = vcmp.lt.f32.partialorder %v2260_v49, %v1021_v63  ;;  %v1019_v55 = vpop.permute.xlu0 %1018 }
 0x2a7   : > { %v1030_v8 = vsel %vm278_vm5, %v1019_v55, %v1021_v63  ;;  %v1079_v54 = vsel %vm1040_vm11, %v2260_v49, %v1021_v63 }
 0x2a8   : > { %vm1039_vm12 = vcmp.lt.f32.partialorder %v2264_v58, %v1030_v8  ;;  %1092 = vrot.lane.b32.xlu1 %v1079_v54, %s1393_s25 }
 0x2a9   : > { %v1029_v0 = vpop.permute.xlu1 %1028  ;;  %v1078_v6 = vsel %vm1039_vm12, %v2264_v58, %v1030_v8 }
 0x2aa   : > { %vm1044_vm4 = vcmp.lt.f32.partialorder %v2274_v43, %v1029_v0  ;;  %1090 = vrot.lane.b32.xlu0 %v1078_v6, %s1393_s25  ;;  %v1027_v24 = vpop.permute.xlu0 %1026 }
 0x2ab   : > { %v1032_v2 = vsel %vm278_vm5, %v1027_v24, %v1029_v0  ;;  %v1083_v3 = vsel %vm1044_vm4, %v2274_v43, %v1029_v0 }
 0x2ac   : > { %vm1043_vm2 = vcmp.lt.f32.partialorder %v2284_v16, %v1032_v2  ;;  %1100 = vrot.lane.b32.xlu1 %v1083_v3, %s1393_s25 }
 0x2ad   : > { %v1054_v37 = vpop.permute.xlu1 %1053  ;;  %v1082_v18 = vsel %vm1043_vm2, %v2284_v16, %v1032_v2 }
 0x2ae   : > { %v1073_v19 = vsel %vm1040_vm11, %v2245_v30, %v1054_v37  ;;  %1098 = vrot.lane.b32.xlu0 %v1082_v18, %s1393_s25  ;;  %v1052_v1 = vpop.permute.xlu0 %1051 }
 0x2af   : > { %v1063_v23 = vsel %vm278_vm5, %v1052_v1, %v1054_v37 }
 0x2b0   : > { %1125 = vrot.lane.b32.xlu1 %v1073_v19, %s1393_s25  ;;  %v1072_v61 = vsel %vm1039_vm12, %v2250_v36, %v1063_v23 }
 0x2b2   : > { %1123 = vrot.lane.b32.xlu0 %v1072_v61, %s1393_s25 }
 0x2b5   : > { %v1025_v44 = vpop.permute.xlu1 %1024 }
 0x2b6   : > { %vm1042_vm13 = vcmp.lt.f32.partialorder %v1009_v40, %v1025_v44  ;;  %v1023_v50 = vpop.permute.xlu0 %1022 }
 0x2b7   : > { %v1031_v52 = vsel %vm278_vm5, %v1023_v50, %v1025_v44  ;;  %v1081_v21 = vsel %vm1042_vm13, %v1009_v40, %v1025_v44 }
 0x2b8   : > { %vm1041_vm14 = vcmp.lt.f32.partialorder %v1008_v34, %v1031_v52  ;;  %1096 = vrot.lane.b32.xlu1 %v1081_v21, %s1393_s25 }
 0x2b9   : > { %v1058_v20 = vpop.permute.xlu1 %1057  ;;  %v1080_v28 = vsel %vm1041_vm14, %v1008_v34, %v1031_v52 }
 0x2ba   : > { %v1075_v27 = vsel %vm1042_vm13, %v2306_v51, %v1058_v20  ;;  %1094 = vrot.lane.b32.xlu0 %v1080_v28, %s1393_s25  ;;  %v1056_v31 = vpop.permute.xlu0 %1055 }
 0x2bb   : > { %v1064_v48 = vsel %vm278_vm5, %v1056_v31, %v1058_v20 }
 0x2bc   : > { %1129 = vrot.lane.b32.xlu1 %v1075_v27, %s1393_s25  ;;  %v1074_v47 = vsel %vm1041_vm14, %v963_v29, %v1064_v48 }
 0x2bd   : > { %v1062_v7 = vpop.permute.xlu1 %1061 }
 0x2be   : > { %v1077_v56 = vsel %vm1044_vm4, %v2254_v25, %v1062_v7  ;;  %1127 = vrot.lane.b32.xlu0 %v1074_v47, %s1393_s25  ;;  %v1060_v26 = vpop.permute.xlu0 %1059 }
 0x2bf   : > { %v1065_v38 = vsel %vm278_vm5, %v1060_v26, %v1062_v7 }
 0x2c0   : > { %1133 = vrot.lane.b32.xlu1 %v1077_v56, %s1393_s25  ;;  %v1076_v14 = vsel %vm1043_vm2, %v2258_v46, %v1065_v38 }
 0x2c2   : > { %1131 = vrot.lane.b32.xlu0 %v1076_v14, %s1393_s25 }
 0x31a   : > { %v1093_v10 = vpop.permute.xlu1 %1092 }
 0x31c   : > { %v1091_v13 = vpop.permute.xlu0 %1090 }
 0x31d   : > { %v1102_v53 = vsel %vm376_vm7, %v1091_v13, %v1093_v10  ;;  %vm1111_vm15 = vcmp.lt.f32.partialorder %v2264_v58, %v1091_v13 }
 0x31e   : > { %v1101_v15 = vpop.permute.xlu1 %1100  ;;  %vm1112_vm5 = vcmp.lt.f32.partialorder %v2260_v49, %v1102_v53 }
 0x320   : > { %v1099_v11 = vpop.permute.xlu0 %1098 }
 0x321   : > { %vm1115_vm1 = vcmp.lt.f32.partialorder %v2284_v16, %v1099_v11 }
 0x322   : > { %v1126_v63 = vpop.permute.xlu1 %1125 }
 0x324   : > { %v1124_v59 = vpop.permute.xlu0 %1123 }
 0x325   : > { %v1135_v57 = vsel %vm376_vm7, %v1124_v59, %v1126_v63  ;;  %v1144_v55 = vsel %vm1111_vm15, %v2250_v36, %v1124_v59  ;;  %v1104_v36 = vsel %vm376_vm7, %v1099_v11, %v1101_v15 }
 0x326   : > { %v1145_v60 = vsel %vm1112_vm5, %v2245_v30, %v1135_v57  ;;  %v1150_v8 = vmul.f32 0.33333334, %v1144_v55  ;;  %vm1116_vm3 = vcmp.lt.f32.partialorder %v2274_v43, %v1104_v36 }
 0x327   : > { %v1151_v54 = vmul.f32 0.33333334, %v1145_v60 }
 0x328   : > { %1162 = vrot.lane.b32.xlu0 %v1150_v8, %s1395_s27 }
 0x329   : > { %1164 = vrot.lane.b32.xlu1 %v1151_v54, %s1395_s27 }
 0x32a   : > { %v1097_v5 = vpop.permute.xlu1 %1096 }
 0x32c   : > { %v1095_v32 = vpop.permute.xlu0 %1094 }
 0x32d   : > { %v1103_v12 = vsel %vm376_vm7, %v1095_v32, %v1097_v5  ;;  %vm1113_vm0 = vcmp.lt.f32.partialorder %v1008_v34, %v1095_v32 }
 0x32e   : > { %v1130_v58 = vpop.permute.xlu1 %1129  ;;  %vm1114_vm6 = vcmp.lt.f32.partialorder %v1009_v40, %v1103_v12 }
 0x330   : > { %v1128_v0 = vpop.permute.xlu0 %1127 }
 0x331   : > { %v1136_v49 = vsel %vm376_vm7, %v1128_v0, %v1130_v58  ;;  %v1146_v6 = vsel %vm1113_vm0, %v963_v29, %v1128_v0 }
 0x332   : > { %v1147_v30 = vsel %vm1114_vm6, %v2306_v51, %v1136_v49  ;;  %v1152_v4 = vmul.f32 0.33333334, %v1146_v6  ;;  %v1134_v35 = vpop.permute.xlu1 %1133 }
 0x333   : > { %v1153_v24 = vmul.f32 0.33333334, %v1147_v30 }
 0x334   : > { %1166 = vrot.lane.b32.xlu0 %v1152_v4, %s1395_s27  ;;  %v1132_v2 = vpop.permute.xlu0 %1131 }
 0x335   : > { %v1137_v3 = vsel %vm376_vm7, %v1132_v2, %v1134_v35  ;;  %v1148_v42 = vsel %vm1115_vm1, %v2258_v46, %v1132_v2  ;;  %1168 = vrot.lane.b32.xlu1 %v1153_v24, %s1395_s27 }
 0x336   : > { %v1149_v9 = vsel %vm1116_vm3, %v2254_v25, %v1137_v3  ;;  %v1154_v39 = vmul.f32 0.33333334, %v1148_v42 }
 0x337   : > { %v1155_v37 = vmul.f32 0.33333334, %v1149_v9 }
 0x338   : > { %1170 = vrot.lane.b32.xlu0 %v1154_v39, %s1395_s27 }
 0x339   : > { %1172 = vrot.lane.b32.xlu1 %v1155_v37, %s1395_s27 }
 0x39a   : > { %v1163_v16 = vpop.permute.xlu0 %1162 }
 0x39b   : > { %v1165_v18 = vpop.permute.xlu1 %1164 }
 0x39c   : > { %v1175_v45 = vsel %vm1174_vm8, %v1163_v16, %v1165_v18 }
 0x39d   : > { %1181 = vst [vmem:[%s109_s30 - $0x2] sm:$0xfc] %v1175_v45 }
 0x3a6   : > { %v1167_v43 = vpop.permute.xlu0 %1166 }
 0x3a7   : > { %v1169_v46 = vpop.permute.xlu1 %1168 }
 0x3a8   : > { %v1176_v25 = vsel %vm1174_vm8, %v1167_v43, %v1169_v46 }
 0x3a9   : > { %1182 = vst [vmem:[%s109_s30 + $0x6] sm:$0xff] %v1176_v25 }
 0x3aa   : > { %v1171_v51 = vpop.permute.xlu0 %1170 }
 0x3ab   : > { %v1173_v17 = vpop.permute.xlu1 %1172 }
 0x3ac   : > { %v1177_v19 = vsel %vm1174_vm8, %v1171_v51, %v1173_v17 }
 0x3ad   : > { %1183 = vst [vmem:[%s109_s30 + $0xe] sm:$0x3] %v1177_v19 }
 0x3ae   : > { %1340 = shalt.err (!%p1337_p3)
}
 0x3af   : > { %s1341_s20 = scalar_lea.hbm %s2360_s11, 256  ;;  %s1345_s23 = scalar_lea.hbm %s2405_s1, 512 }
 0x3b0   : > { %p1342_p4 = scmp.ne.s32.totalorder %s2360_s11, %s1341_s20  ;;  %p1346_p9 = scmp.lt.u32.totalorder %s2360_s11, %s2405_s1 }
 0x3b1   : > { %p1347_p10 = scmp.lt.u32.totalorder %s1345_s23, %s1341_s20  ;;  %p1349_p12 = scmp.lt.u32.totalorder %s1341_s20, %s2360_s11 }
 0x3b2   : > { %p1343_p7 = pnand %p1342_p4, %p1447_p5 }
 0x3b3   : > { %p1348_p11 = por %p1347_p10, %p1346_p9 }
 0x3b4   : > { %p1344_p8 = pneg %p1343_p7 }
 0x3b5   : > { %p1350_p13 = por %p1349_p12, %p1348_p11 }
 0x3b7   : > { %p1351_p0 = pnand %p1350_p13, %p1344_p8 }
 0x3b9   : > { %1354 = shalt.err (!%p1351_p0)
}
 0x3ba   : > { %s1397_s26 = smov 128   ;;  %s1398_s27 = smov 8  }
 0x3bb   : > { %1273 = dma.vmem_to_hbm [thread:$0]  (%p1447_p5), %s2355_s2, 256, %s2360_s11, %s2363_s13, %s1397_s26, %s1397_s26, %s1398_s27  }
 0x3bc PF: > { %p1279_p1 = scmp.ge.s32.totalorder %s1389_s9, 2  ;;  %s1213_s28 = sand.u32 1, %s1377_s6  }
 0x3bd   : > { %s1214_s29 = scalar_lea.sflag [#allocation4], %s1213_s28 }
 0x3be   : > { %p1276_p2 = pnand %p1279_p1, %p1451_p6 }
 0x3c0   : > { %1372 = dma.done.wait (!%p1276_p2), %s1214_s29, 256  }
 0x3c1   : > { %1374 = vsyncadd (!%p1276_p2), %s1214_s29, 4294967040  ;;  %p11_p3 = scmp.ge.s32.totalorder %s1434_s12, 4   ;;  %s2434_s6 = smov %s1381_s7 }
 0x3c2   : > { %s2435_s7 = smov %s1385_s8  ;;  %s2436_s8 = smov %s1445_s15 }
 0x3c3   : > { %s2437_s9 = smov %s1434_s12  ;;  %13 = sbr.rel (!%p11_p3) target bundleno = 3 (0x3), region = 59 }
 0x3ca   :  { %1219 = vsyncpa [#allocation4], 1 }
 0x3cb   :  { %1221 = vsyncpa [#allocation4 + $0x1], 1 }

</bundles_post_ra>
